<compile_context>
chip_gen: v6e
topology: v6e:2x2x1
jax: 0.10.0
libtpu: 0.0.40
codegen_flags: <defaults>
</compile_context>

<pallas_src>
import jax
import jax.numpy as jnp
from jax import lax
from jax.experimental import pallas as pl
from jax.experimental.pallas import tpu as pltpu


def _gru_memory_kernel(x_ref, m_ref, w_ref, b_ref, out_ref):
    rows, D = x_ref.shape
    bb = out_ref.shape[0]
    S = rows // bb
    f32 = jnp.float32

    m_native = m_ref[...]                                    # native dtype (f32 path below)
    # Lane-concat [x | m] -> (rows, 2D) in the matmul dtype (bf16); nearly free
    # since both halves are 128-lane multiples.
    xm = jnp.concatenate([x_ref[...], m_native.astype(x_ref.dtype)], axis=1)

    # One fused MXU matmul, f32 accumulation:
    #   g = [ r_pre | z_pre | x@Wxx + bxx | m@Whh + bhh ]
    g = jnp.dot(xm, w_ref[...], preferred_element_type=f32) + b_ref[...]

    r_t = jax.nn.sigmoid(g[:, 0:D])
    z_t = jax.nn.sigmoid(g[:, D:2 * D])
    # NOTE: reset gate is applied AFTER the Whh matmul (matches the torch module,
    # which differs from the textbook GRU).
    h_ = jnp.tanh(g[:, 2 * D:3 * D] + g[:, 3 * D:4 * D] * r_t)

    m_f32 = m_native.astype(f32)
    updated = h_ + z_t * (m_f32 - h_)                        # == (1 - z)*h + z*m
    mean = jnp.mean(updated.reshape(bb, S, D), axis=1)       # per-batch mean over S
    out_ref[...] = mean.astype(out_ref.dtype)


def memory_updater_gru(prev_m, input_states, params, attention_mask=None, *,
                       block_batch=None):
    """GRU-style memory update.

    prev_m:        (N, M, D)
    input_states:  (N, L, D), L == M (the reference broadcasting requires it)
    params:        six (weight, bias) pairs for xr, hr, xz, hz, xx, hh with the
                   weights PRE-TRANSPOSED to (D_in, D_out), i.e. y = x @ W + b.
    Returns (N, 1, D).  attention_mask is accepted but unused (matches the
    reference forward, which never reads it).
    """
    N, S, D = input_states.shape
    assert prev_m.shape == (N, S, D), "reference broadcasting requires L == M"
    out_dtype = input_states.dtype

    (wxr, bxr), (whr, bhr), (wxz, bxz), (whz, bhz), (wxx, bxx), (whh, bhh) = params

    # Stacked (2D, 4D) weight: columns = [r | z | xx | hh], rows = [x-path ; m-path].
    zero = jnp.zeros((D, D), wxx.dtype)
    w_top = jnp.concatenate([wxr, wxz, wxx, zero], axis=1)
    w_bot = jnp.concatenate([whr, whz, zero, whh], axis=1)
    w_cat = jnp.concatenate([w_top, w_bot], axis=0).astype(jnp.bfloat16)      # (2D, 4D)

    r1 = lambda b: jnp.reshape(b, (1, D)).astype(jnp.float32)
    b_cat = jnp.concatenate(
        [r1(bxr) + r1(bhr), r1(bxz) + r1(bhz), r1(bxx), r1(bhh)], axis=1)     # (1, 4D) f32

    m_itemsize = jnp.dtype(prev_m.dtype).itemsize
    out_itemsize = jnp.dtype(out_dtype).itemsize
    align = 8 if out_itemsize >= 4 else 16        # sublane-aligned output blocks

    # Generation-aware VMEM budget: ~48 MiB on v7x (64 MiB/TC), ~96 MiB on v5e/v6e.
    try:
        vmem_capacity = int(pltpu.get_tpu_info().vmem_capacity_bytes)
    except Exception:
        vmem_capacity = 64 << 20
    vmem_cap = (vmem_capacity * 3) // 4

    if block_batch is None:
        # Per fused row: x tile (bf16, double-buffered) + m tile (native, double-
        # buffered) + ~56 B/feature of f32 intermediates (g, r, z, h_, blend, casts).
        per_row_bytes = D * (2 * 2 * 2 + 2 * m_itemsize + 56)
        fixed_bytes = (2 * D) * (4 * D) * 2 + 4 * D * 4 + (2 << 20)  # weights + bias + slack
        rows_cap = max(align * S, (vmem_cap - fixed_bytes) // per_row_bytes)
        rows_target = int(min(4096, rows_cap))    # amortize ~0.35 us per-step overhead
        bb = max(1, rows_target // S)
        bb = min(bb, pl.cdiv(N, 2))               # keep >= 2 grid steps (v7x megacore)
        bb = max(align, (bb // align) * align)    # avoid masked partial vector stores
        block_batch = int(bb)
    block_batch = int(block_batch)

    n_pad = pl.cdiv(N, block_batch) * block_batch
    rows_blk = block_batch * S

    # Flatten to lane-dense 2-D slabs; x goes in as bf16 (matmul-only operand),
    # prev_m keeps native precision for the f32 elementwise blend.
    x2 = input_states.reshape(N * S, D).astype(jnp.bfloat16)
    m2 = prev_m.reshape(N * S, D)
    if n_pad != N:
        pad_rows = (n_pad - N) * S
        x2 = jnp.pad(x2, ((0, pad_rows), (0, 0)))
        m2 = jnp.pad(m2, ((0, pad_rows), (0, 0)))
    grid_n = n_pad // block_batch

    def build_call(single_buffer_consts):
        def const_spec(shape):
            kwargs = {}
            if single_buffer_consts:
                kwargs["pipeline_mode"] = pl.Buffered(1)  # constants: no double buffer
            return pl.BlockSpec(shape, lambda n: (0, 0), **kwargs)

        grid_spec = pltpu.PrefetchScalarGridSpec(
            num_scalar_prefetch=0,
            grid=(grid_n,),
            in_specs=[
                pl.BlockSpec((rows_blk, D), lambda n: (n, 0)),   # x (bf16)
                pl.BlockSpec((rows_blk, D), lambda n: (n, 0)),   # prev_m (native)
                const_spec((2 * D, 4 * D)),                      # fused weights (bf16)
                const_spec((1, 4 * D)),                          # fused biases (f32)
            ],
            out_specs=pl.BlockSpec((block_batch, D), lambda n: (n, 0)),
        )
        return pl.pallas_call(
            _gru_memory_kernel,
            out_shape=jax.ShapeDtypeStruct((n_pad, D), out_dtype),
            grid_spec=grid_spec,
            compiler_params=pltpu.CompilerParams(
                dimension_semantics=("parallel",),
                vmem_limit_bytes=int(vmem_cap),
            ),
        )

    try:
        out2d = build_call(True)(x2, m2, w_cat, b_cat)
    except Exception:
        # Fallback if Buffered(1) pipeline mode is unavailable in this JAX build.
        out2d = build_call(False)(x2, m2, w_cat, b_cat)

    # keepdim=True semantics of the torch module.
    return out2d[:N].reshape(N, 1, D)


def _reference(prev_m, input_states, params):
    (wxr, bxr), (whr, bhr), (wxz, bxz), (whz, bhz), (wxx, bxx), (whh, bhh) = params
    hi = lax.Precision.HIGHEST
    lin = lambda x, w, b: jnp.dot(x, w, precision=hi) + b  # weights already (D_in, D_out)
    r_t = jax.nn.sigmoid(lin(input_states, wxr, bxr) + lin(prev_m, whr, bhr))
    z_t = jax.nn.sigmoid(lin(input_states, wxz, bxz) + lin(prev_m, whz, bhz))
    h_ = jnp.tanh(lin(input_states, wxx, bxx) + lin(prev_m, whh, bhh) * r_t)
    updated = (1.0 - z_t) * h_ + z_t * prev_m
    return jnp.mean(updated, axis=1, keepdims=True)


def _reference_bf16(prev_m, input_states, params):
    # Mirrors the kernel's numerics: bf16 matmul operands, f32 accumulation,
    # f32 gate / blend / mean math.
    (wxr, bxr), (whr, bhr), (wxz, bxz), (whz, bhz), (wxx, bxx), (whh, bhh) = params
    bf, f32 = jnp.bfloat16, jnp.float32
    x = input_states.astype(bf)
    m = prev_m.astype(bf)
    dot = lambda a, w: jnp.dot(a, w.astype(bf), preferred_element_type=f32)
    r_t = jax.nn.sigmoid(dot(x, wxr) + bxr + dot(m, whr) + bhr)
    z_t = jax.nn.sigmoid(dot(x, wxz) + bxz + dot(m, whz) + bhz)
    h_ = jnp.tanh(dot(x, wxx) + bxx + (dot(m, whh) + bhh) * r_t)
    updated = h_ + z_t * (prev_m.astype(f32) - h_)
    return jnp.mean(updated, axis=1, keepdims=True)


def _init_params(key, D):
    params = []
    for i in range(6):
        kw, kb = jax.random.split(jax.random.fold_in(key, i))
        w = jax.random.normal(kw, (D, D), jnp.float32) * 0.02
        b = jax.random.normal(kb, (D,), jnp.float32) * 0.02
        params.append((w, b))
    return params


if __name__ == "__main__":
    # Small but TPU-friendly shapes: D multiple of 128 (lane-dense), S multiple
    # of 8 (sublane-dense fused rows); heuristic picks block_batch=8, grid of 2.
    N, S, D = 16, 8, 128  # batch, memory size (== seq len), n_embd
    key = jax.random.PRNGKey(0)
    k_m, k_x, k_p = jax.random.split(key, 3)

    prev_m = jax.random.normal(k_m, (N, S, D), jnp.float32)
    input_states = jax.random.normal(k_x, (N, S, D), jnp.float32)
    params = _init_params(k_p, D)

    out = memory_updater_gru(prev_m, input_states, params)
    out = jax.block_until_ready(out)
    assert out.shape == (N, 1, D)

    ref_bf16 = _reference_bf16(prev_m, input_states, params)
    ref_full = _reference(prev_m, input_states, params)
    assert jnp.allclose(out, ref_bf16, atol=2e-3, rtol=2e-3), "mismatch vs bf16-matched reference"
    assert jnp.allclose(out, ref_full, atol=2e-2, rtol=2e-2), "mismatch vs full-precision reference"
    print("KERNEL_OK")
</pallas_src>

<mosaic_0001>
module attributes {stable_mosaic.version = 11 : i64} {
  func.func @_gru_memory_kernel(%arg0: i32, %arg1: memref<64x128xbf16, #tpu.memory_space<vmem>>, %arg2: memref<64x128xf32, #tpu.memory_space<vmem>>, %arg3: memref<256x512xbf16, #tpu.memory_space<vmem>>, %arg4: memref<1x512xf32, #tpu.memory_space<vmem>>, %arg5: memref<8x128xf32, #tpu.memory_space<vmem>>) attributes {dimension_semantics = [#tpu.dimension_semantics<parallel>], iteration_bounds = array<i64: 2>, scalar_prefetch = 0 : i64, scratch_operands = 0 : i64, tpu.core_type = #tpu.core_type<tc>, window_params = [{transform_indices = @transform_0, window_bounds = array<i64: 64, 128>}, {transform_indices = @transform_1, window_bounds = array<i64: 64, 128>}, {pipeline_mode = #tpu.pipeline_mode<synchronous>, transform_indices = @transform_2, window_bounds = array<i64: 256, 512>}, {pipeline_mode = #tpu.pipeline_mode<synchronous>, transform_indices = @transform_3, window_bounds = array<i64: 1, 512>}, {transform_indices = @transform_4, window_bounds = array<i64: 8, 128>}]} {
    %c0 = arith.constant 0 : index
    %c0_0 = arith.constant 0 : index
    %0 = vector.load %arg2[%c0, %c0_0] : memref<64x128xf32, #tpu.memory_space<vmem>>, vector<64x128xf32>
    %c0_1 = arith.constant 0 : index
    %c0_2 = arith.constant 0 : index
    %1 = vector.load %arg1[%c0_1, %c0_2] : memref<64x128xbf16, #tpu.memory_space<vmem>>, vector<64x128xbf16>
    %2 = arith.truncf %0 : vector<64x128xf32> to vector<64x128xbf16>
    %3 = tpu.concatenate %1, %2 in 1 : vector<64x128xbf16>, vector<64x128xbf16> -> vector<64x256xbf16>
    %c0_3 = arith.constant 0 : index
    %c0_4 = arith.constant 0 : index
    %4 = vector.load %arg3[%c0_3, %c0_4] : memref<256x512xbf16, #tpu.memory_space<vmem>>, vector<256x512xbf16>
    %cst = arith.constant dense<0.000000e+00> : vector<64x512xf32>
    %5 = tpu.matmul %3, %4, %cst {dimension_numbers = #tpu.dot_dimension_numbers<[1], [0], [0], [1], [0, 0, 1, 1], [], []>} : vector<64x256xbf16>, vector<256x512xbf16>, vector<64x512xf32> -> vector<64x512xf32>
    %c0_5 = arith.constant 0 : index
    %c0_6 = arith.constant 0 : index
    %6 = vector.load %arg4[%c0_5, %c0_6] : memref<1x512xf32, #tpu.memory_space<vmem>>, vector<1x512xf32>
    %7 = vector.broadcast %6 : vector<1x512xf32> to vector<64x512xf32>
    %8 = arith.addf %5, %7 : vector<64x512xf32>
    %9 = vector.extract_strided_slice %8 {offsets = [0, 0], sizes = [64, 128], strides = [1, 1]} : vector<64x512xf32> to vector<64x128xf32>
    %10 = arith.negf %9 : vector<64x128xf32>
    %11 = math.exp %10 : vector<64x128xf32>
    %cst_7 = arith.constant 1.000000e+00 : f32
    %12 = vector.broadcast %cst_7 : f32 to vector<64x128xf32>
    %13 = arith.addf %12, %11 : vector<64x128xf32>
    %14 = arith.divf %12, %13 : vector<64x128xf32>
    %15 = vector.extract_strided_slice %8 {offsets = [0, 128], sizes = [64, 128], strides = [1, 1]} : vector<64x512xf32> to vector<64x128xf32>
    %16 = arith.negf %15 : vector<64x128xf32>
    %17 = math.exp %16 : vector<64x128xf32>
    %cst_8 = arith.constant 1.000000e+00 : f32
    %18 = vector.broadcast %cst_8 : f32 to vector<64x128xf32>
    %19 = arith.addf %18, %17 : vector<64x128xf32>
    %20 = arith.divf %18, %19 : vector<64x128xf32>
    %21 = vector.extract_strided_slice %8 {offsets = [0, 256], sizes = [64, 128], strides = [1, 1]} : vector<64x512xf32> to vector<64x128xf32>
    %22 = vector.extract_strided_slice %8 {offsets = [0, 384], sizes = [64, 128], strides = [1, 1]} : vector<64x512xf32> to vector<64x128xf32>
    %23 = arith.mulf %22, %14 : vector<64x128xf32>
    %24 = arith.addf %21, %23 : vector<64x128xf32>
    %25 = math.tanh %24 : vector<64x128xf32>
    %26 = arith.subf %0, %25 : vector<64x128xf32>
    %27 = arith.mulf %20, %26 : vector<64x128xf32>
    %28 = arith.addf %25, %27 : vector<64x128xf32>
    %29 = vector.shape_cast %28 : vector<64x128xf32> to vector<8x8x128xf32>
    %cst_9 = arith.constant dense<0.000000e+00> : vector<8x128xf32>
    %30 = vector.multi_reduction <add>, %29, %cst_9 [1] : vector<8x8x128xf32> to vector<8x128xf32>
    %cst_10 = arith.constant 8.000000e+00 : f32
    %31 = vector.broadcast %cst_10 : f32 to vector<8x128xf32>
    %32 = arith.divf %30, %31 : vector<8x128xf32>
    %c0_11 = arith.constant 0 : index
    %c0_12 = arith.constant 0 : index
    %33 = vector.load %arg5[%c0_11, %c0_12] : memref<8x128xf32, #tpu.memory_space<vmem>>, vector<8x128xf32>
    tpu.vector_store %arg5[%c0_11, %c0_12], %32 {strides = array<i32>} : memref<8x128xf32, #tpu.memory_space<vmem>>, vector<8x128xf32>,
    return
  }
  func.func @transform_0(%arg0: i32) -> (i32, i32) {
    %c0_i32 = arith.constant 0 : i32
    %c0_i32_0 = arith.constant 0 : i32
    return %arg0, %c0_i32 : i32, i32
  }
  func.func @transform_1(%arg0: i32) -> (i32, i32) {
    %c0_i32 = arith.constant 0 : i32
    %c0_i32_0 = arith.constant 0 : i32
    return %arg0, %c0_i32 : i32, i32
  }
  func.func @transform_2(%arg0: i32) -> (i32, i32) {
    %c0_i32 = arith.constant 0 : i32
    %c0_i32_0 = arith.constant 0 : i32
    %c0_i32_1 = arith.constant 0 : i32
    return %c0_i32, %c0_i32_0 : i32, i32
  }
  func.func @transform_3(%arg0: i32) -> (i32, i32) {
    %c0_i32 = arith.constant 0 : i32
    %c0_i32_0 = arith.constant 0 : i32
    %c0_i32_1 = arith.constant 0 : i32
    return %c0_i32, %c0_i32_0 : i32, i32
  }
  func.func @transform_4(%arg0: i32) -> (i32, i32) {
    %c0_i32 = arith.constant 0 : i32
    %c0_i32_0 = arith.constant 0 : i32
    return %arg0, %c0_i32 : i32, i32
  }
}

module attributes {stable_mosaic.version = 11 : i64} {
  func.func @_gru_memory_kernel(%arg0: i32, %arg1: memref<64x128xbf16, #tpu.memory_space<vmem>>, %arg2: memref<64x128xf32, #tpu.memory_space<vmem>>, %arg3: memref<256x512xbf16, #tpu.memory_space<vmem>>, %arg4: memref<1x512xf32, #tpu.memory_space<vmem>>, %arg5: memref<8x128xf32, #tpu.memory_space<vmem>>) attributes {dimension_semantics = [#tpu.dimension_semantics<parallel>], iteration_bounds = array<i64: 2>, scalar_prefetch = 0 : i64, scratch_operands = 0 : i64, tpu.core_type = #tpu.core_type<tc>, window_params = [{transform_indices = @transform_0, window_bounds = array<i64: 64, 128>}, {transform_indices = @transform_1, window_bounds = array<i64: 64, 128>}, {pipeline_mode = #tpu.pipeline_mode<synchronous>, transform_indices = @transform_2, window_bounds = array<i64: 256, 512>}, {pipeline_mode = #tpu.pipeline_mode<synchronous>, transform_indices = @transform_3, window_bounds = array<i64: 1, 512>}, {transform_indices = @transform_4, window_bounds = array<i64: 8, 128>}]} {
    %c0 = arith.constant 0 : index
    %c0_0 = arith.constant 0 : index
    %0 = vector.load %arg2[%c0, %c0_0] : memref<64x128xf32, #tpu.memory_space<vmem>>, vector<64x128xf32>
    %c0_1 = arith.constant 0 : index
    %c0_2 = arith.constant 0 : index
    %1 = vector.load %arg1[%c0_1, %c0_2] : memref<64x128xbf16, #tpu.memory_space<vmem>>, vector<64x128xbf16>
    %2 = arith.truncf %0 : vector<64x128xf32> to vector<64x128xbf16>
    %3 = tpu.concatenate %1, %2 in 1 : vector<64x128xbf16>, vector<64x128xbf16> -> vector<64x256xbf16>
    %c0_3 = arith.constant 0 : index
    %c0_4 = arith.constant 0 : index
    %4 = vector.load %arg3[%c0_3, %c0_4] : memref<256x512xbf16, #tpu.memory_space<vmem>>, vector<256x512xbf16>
    %cst = arith.constant dense<0.000000e+00> : vector<64x512xf32>
    %5 = tpu.matmul %3, %4, %cst {dimension_numbers = #tpu.dot_dimension_numbers<[1], [0], [0], [1], [0, 0, 1, 1], [], []>} : vector<64x256xbf16>, vector<256x512xbf16>, vector<64x512xf32> -> vector<64x512xf32>
    %c0_5 = arith.constant 0 : index
    %c0_6 = arith.constant 0 : index
    %6 = vector.load %arg4[%c0_5, %c0_6] : memref<1x512xf32, #tpu.memory_space<vmem>>, vector<1x512xf32>
    %7 = vector.broadcast %6 : vector<1x512xf32> to vector<64x512xf32>
    %8 = arith.addf %5, %7 : vector<64x512xf32>
    %9 = vector.extract_strided_slice %8 {offsets = [0, 0], sizes = [64, 128], strides = [1, 1]} : vector<64x512xf32> to vector<64x128xf32>
    %10 = arith.negf %9 : vector<64x128xf32>
    %11 = math.exp %10 : vector<64x128xf32>
    %cst_7 = arith.constant 1.000000e+00 : f32
    %12 = vector.broadcast %cst_7 : f32 to vector<64x128xf32>
    %13 = arith.addf %12, %11 : vector<64x128xf32>
    %14 = arith.divf %12, %13 : vector<64x128xf32>
    %15 = vector.extract_strided_slice %8 {offsets = [0, 128], sizes = [64, 128], strides = [1, 1]} : vector<64x512xf32> to vector<64x128xf32>
    %16 = arith.negf %15 : vector<64x128xf32>
    %17 = math.exp %16 : vector<64x128xf32>
    %cst_8 = arith.constant 1.000000e+00 : f32
    %18 = vector.broadcast %cst_8 : f32 to vector<64x128xf32>
    %19 = arith.addf %18, %17 : vector<64x128xf32>
    %20 = arith.divf %18, %19 : vector<64x128xf32>
    %21 = vector.extract_strided_slice %8 {offsets = [0, 256], sizes = [64, 128], strides = [1, 1]} : vector<64x512xf32> to vector<64x128xf32>
    %22 = vector.extract_strided_slice %8 {offsets = [0, 384], sizes = [64, 128], strides = [1, 1]} : vector<64x512xf32> to vector<64x128xf32>
    %23 = arith.mulf %22, %14 : vector<64x128xf32>
    %24 = arith.addf %21, %23 : vector<64x128xf32>
    %25 = math.tanh %24 : vector<64x128xf32>
    %26 = arith.subf %0, %25 : vector<64x128xf32>
    %27 = arith.mulf %20, %26 : vector<64x128xf32>
    %28 = arith.addf %25, %27 : vector<64x128xf32>
    %29 = vector.shape_cast %28 : vector<64x128xf32> to vector<8x8x128xf32>
    %cst_9 = arith.constant dense<0.000000e+00> : vector<8x128xf32>
    %30 = vector.multi_reduction <add>, %29, %cst_9 [1] : vector<8x8x128xf32> to vector<8x128xf32>
    %cst_10 = arith.constant 8.000000e+00 : f32
    %31 = vector.broadcast %cst_10 : f32 to vector<8x128xf32>
    %32 = arith.divf %30, %31 : vector<8x128xf32>
    %c0_11 = arith.constant 0 : index
    %c0_12 = arith.constant 0 : index
    %33 = vector.load %arg5[%c0_11, %c0_12] : memref<8x128xf32, #tpu.memory_space<vmem>>, vector<8x128xf32>
    tpu.vector_store %arg5[%c0_11, %c0_12], %32 {strides = array<i32>} : memref<8x128xf32, #tpu.memory_space<vmem>>, vector<8x128xf32>,
    return
  }
  func.func @transform_0(%arg0: i32) -> (i32, i32) {
    %c0_i32 = arith.constant 0 : i32
    %c0_i32_0 = arith.constant 0 : i32
    return %arg0, %c0_i32 : i32, i32
  }
  func.func @transform_1(%arg0: i32) -> (i32, i32) {
    %c0_i32 = arith.constant 0 : i32
    %c0_i32_0 = arith.constant 0 : i32
    return %arg0, %c0_i32 : i32, i32
  }
  func.func @transform_2(%arg0: i32) -> (i32, i32) {
    %c0_i32 = arith.constant 0 : i32
    %c0_i32_0 = arith.constant 0 : i32
    %c0_i32_1 = arith.constant 0 : i32
    return %c0_i32, %c0_i32_0 : i32, i32
  }
  func.func @transform_3(%arg0: i32) -> (i32, i32) {
    %c0_i32 = arith.constant 0 : i32
    %c0_i32_0 = arith.constant 0 : i32
    %c0_i32_1 = arith.constant 0 : i32
    return %c0_i32, %c0_i32_0 : i32, i32
  }
  func.func @transform_4(%arg0: i32) -> (i32, i32) {
    %c0_i32 = arith.constant 0 : i32
    %c0_i32_0 = arith.constant 0 : i32
    return %arg0, %c0_i32 : i32, i32
  }
}

</mosaic_0001>

<bundles_post_ra>
// kernel: tpu_custom_call.1
= control target key start
LH: loop header
LB: loop body
LE: loop exit
PB: predicated region body
PF: predicated region fallthrough
CT: control target
= control target key end

     0   :  { %s2103_s0 = inlined_call_operand.hbm [shape: bf16[128,128], index: 0, kind: input, shape index: {}]   ;;  %s2104_s1 = inlined_call_operand.hbm [shape: f32[128,128], index: 1, kind: input, shape index: {}]   ;;  %s2105_s2 = inlined_call_operand.hbm [shape: bf16[256,512], index: 2, kind: input, shape index: {}]   ;;  %s2106_s3 = inlined_call_operand.vmem [shape: f32[1,512], index: 3, kind: input, shape index: {}]   ;;  %s2107_s4 = inlined_call_operand.hbm [shape: f32[16,128], index: 4, kind: output, shape index: {}]  }
   0x1   :  { %2111 = sst [smem:[#allocation13_spill]] %s2103_s0 }
   0x2   :  { %2112 = sst [smem:[#allocation14_spill]] %s2105_s2 }
   0x3   :  { %9 = vsyncpa [#allocation3], 0 }
   0x4   :  { %11 = vsyncpa [#allocation3 + $0x1], 0 }
   0x5   :  { %12 = vsyncpa [#allocation6], 0 }
   0x6   :  { %14 = vsyncpa [#allocation6 + $0x1], 0 }
   0x7   :  { %15 = vsyncpa [#allocation4], 0 }
   0x8   :  { %17 = vsyncpa [#allocation4 + $0x1], 0  ;;  %s1753_s15 = smov 0   ;;  %s1755_s16 = smov 0  }
   0x9   :  { %s1757_s17 = smov 0   ;;  %s1759_s18 = smov 0  }
   0xa LB: > { %s1774_s19 = sadd.s32 4294967295, %s1716_s18   ;;  %s1209_s20 = sadd.s32 4294967294, %s1716_s18   ;;  %s1716_s18 = sphi %s1759_s18, %s2131_s18   ;;  %s1712_s17 = sphi %s1757_s17, %s2130_s17   ;;  %s1708_s16 = sphi %s1755_s16, %s2129_s16   ;;  %s1704_s15 = sphi %s1753_s15, %s2128_s15  }
   0xb   : > { %p43_p0 = scmp.ne.s32.totalorder %s1708_s16, %s1704_s15  ;;  %p2108_p1 = scmp.eq.s32.totalorder %s1774_s19, 0 }
   0xc   : > { %p141_p3 = scmp.eq.s32.totalorder %s1209_s20, 1  ;;  %p1210_p5 = scmp.ge.s32.totalorder %s1716_s18, 1 }
   0xd   : > { %p1783_p4 = por %p2108_p1, %p43_p0  ;;  %p148_p7 = scmp.lt.s32.totalorder %s1716_s18, 3 }
   0xe   : > { %p1788_p6 = por %p141_p3, %p43_p0  ;;  %s1718_s24 = smov [#allocation7]  }
   0xf   : > { %s2113_s21 = scalar_select %p1783_p4, 1, 0 }
  0x10   : > { %s2114_s22 = scalar_select %p1788_p6, 1, 0 }
  0x11   : > { %p1793_p8 = pnand %p1210_p5, %p148_p7  ;;  %s160_s25 = sshll.u32 %s1718_s24, 4  ;;  %s161_s25 = int_to_ptr.vmem [resolvable:$true] %s160_s25 }
  0x12   : > { %s1807_s27 = sadd.s32 1, %s1716_s18   ;;  %s30_s28 = sadd.s32 1, %s1712_s17 }
  0x13   : > { %p1324_p9 = pneg %p1793_p8  ;;  %s27_s29 = ssub.s32 %s1716_s18, %s1807_s27 }
  0x14   : > { %s1573_s30 = scalar_lea.vmem %s161_s25, 8192  ;;  %p1581_p5 = scmp.lt.s32.totalorder %s161_s25, %s161_s25 }
  0x15   : > { %p1802_p11 = pnand %p1324_p9, %p2108_p1  ;;  %p1574_p13 = scmp.ne.s32.totalorder %s161_s25, %s1573_s30 }
  0x16   : > { %p1582_p7 = scmp.lt.s32.totalorder %s1573_s30, %s1573_s30 }
  0x17   : > { %p1564_p12 = pneg %p1802_p11 }
  0x18   : > { %p1583_p10 = por %p1582_p7, %p1581_p5 }
  0x19   : > { %p1576_p0 = pnand %p1574_p13, %p1564_p12 }
  0x1b   : > { %p1577_p3 = pneg %p1576_p0 }
  0x1d   : > { %p1584_p2 = pnand %p1583_p10, %p1577_p3 }
  0x1f   : > { %1587 = shalt.err (!%p1584_p2)
}
  0x20   : > { %s1719_s5 = smov 256   ;;  %s1720_s6 = smov 16  }
  0x21   : > { %s2117_s2 = sld [smem:[#allocation14_spill]]  ;;  %p28_p9 = scmp.eq.s32.totalorder %s27_s29, 0 }
  0x22   : > { %p37_p12 = scmp.ne.s32.totalorder %s1712_s17, %s1708_s16  ;;  %p38_p10 = scmp.eq.s32.totalorder %s1716_s18, 0 }
  0x23   : > { %p1340_p2 = scmp.lt.s32.totalorder %s1716_s18, 2  ;;  %p2118_p0 = scmp.eq.s32.totalorder %s1774_s19, 1 }
  0x24   : > { %s1824_s9 = scalar_select %p28_p9, %s1712_s17, %s30_s28  }
  0x25   : > { %p39_p13 = por %p38_p10, %p37_p12  ;;  %p1828_p3 = por %p2118_p0, %p37_p12 }
  0x26   : > { %s1833_s11 = sand.u32 1, %s1712_s17   ;;  %s1312_s12 = sshll.u32 %s1716_s18, 9 }
  0x27   : > { %1327 = dma.hbm_to_vmem [thread:$0]  (!%p1802_p11), %s2117_s2, 8192, %s161_s25, [#allocation6], %s1719_s5, %s1719_s5, %s1720_s6  }
  0x28   : > { %s2119_s10 = scalar_select %p1828_p3, 1, 0 }
  0x29   : > { %s1213_s13 = sshll.u32 %s1833_s11, 5  ;;  %s2120_s0 = sld [smem:[#allocation13_spill]] }
  0x2a   : > { %s181_s25 = scalar_lea.vmem [#allocation2], %s1213_s13  ;;  %p1842_p11 = pnand %p1340_p2, %p39_p13 }
  0x2b   : > { %s188_s26 = sshll.u32 %s181_s25, 4  ;;  %s178_s29 = scalar_lea.sflag [#allocation3], %s1833_s11  ;;  %s1846_s26 = int_to_ptr.vmem [resolvable:$true] %s188_s26 }
  0x2c   : > { %p1590_p7 = pneg %p1842_p11 }
  0x2f   : > { %s1840_s24 = scalar_lea.hbm %s2120_s0, %s1312_s12  ;;  %s1593_s7 = scalar_lea.hbm %s2120_s0, 1024 }
  0x30   : > { %s1588_s30 = scalar_lea.hbm %s1840_s24, 512  ;;  %p1594_p10 = scmp.lt.s32.totalorder %s1840_s24, %s2120_s0 }
  0x31   : > { %p1589_p5 = scmp.ne.s32.totalorder %s1840_s24, %s1588_s30  ;;  %p1595_p2 = scmp.lt.s32.totalorder %s1593_s7, %s1588_s30 }
  0x33   : > { %p1591_p9 = pnand %p1590_p7, %p1589_p5  ;;  %p1596_p13 = por %p1595_p2, %p1594_p10 }
  0x35   : > { %p1592_p12 = pneg %p1591_p9 }
  0x37   : > { %p1597_p0 = pnand %p1596_p13, %p1592_p12 }
  0x39   : > { %1600 = shalt.err (!%p1597_p0)
}
  0x3a   : > { %s1601_s13 = scalar_lea.vmem %s1846_s26, 512  ;;  %s1721_s14 = smov [#allocation2]  }
  0x3b   : > { %p1602_p1 = scmp.ne.s32.totalorder %s1846_s26, %s1601_s13  ;;  %s1606_s20 = sshll.u32 %s1721_s14, 4  ;;  %s1607_s20 = int_to_ptr.vmem [resolvable:$false] %s1606_s20 }
  0x3c   : > { %s1608_s25 = scalar_lea.vmem %s1607_s20, 1024  ;;  %p1609_p6 = scmp.lt.s32.totalorder %s1846_s26, %s1607_s20 }
  0x3d   : > { %p1604_p5 = pnand %p1602_p1, %p1590_p7  ;;  %p1610_p3 = scmp.lt.s32.totalorder %s1608_s25, %s1601_s13 }
  0x3f   : > { %p1605_p9 = pneg %p1604_p5  ;;  %p1611_p4 = por %p1610_p3, %p1609_p6 }
  0x41   : > { %p1612_p10 = pnand %p1611_p4, %p1605_p9 }
  0x43   : > { %1615 = shalt.err (!%p1612_p10)
}
  0x44   : > { %s1722_s30 = smov 64   ;;  %s1723_s5 = smov 4  }
  0x45   : > { %1331 = dma.hbm_to_vmem [thread:$0]  (!%p1842_p11), %s1840_s24, 512, %s1846_s26, %s178_s29, %s1722_s30, %s1722_s30, %s1723_s5  }
  0x46   : > { %s198_s6 = sand.u32 1, %s1716_s18   ;;  %s1216_s7 = sshll.u32 %s1833_s11, 6 }
  0x47   : > { %s1313_s8 = sshll.u32 %s1716_s18, 10  ;;  %s202_s12 = scalar_lea.vmem [#allocation5], %s1216_s7 }
  0x48   : > { %s209_s13 = sshll.u32 %s202_s12, 4  ;;  %s1881_s25 = scalar_lea.hbm %s2104_s1, %s1313_s8  ;;  %s1883_s13 = int_to_ptr.vmem [resolvable:$true] %s209_s13 }
  0x49   : > { %s1885_s0 = scalar_lea.sflag [#allocation6], %s198_s6  ;;  %s1616_s2 = scalar_lea.hbm %s1881_s25, 1024 }
  0x4a   : > { %p1617_p1 = scmp.ne.s32.totalorder %s1881_s25, %s1616_s2  ;;  %s1621_s26 = scalar_lea.hbm %s2104_s1, 2048 }
  0x4b   : > { %p1622_p3 = scmp.lt.s32.totalorder %s1881_s25, %s2104_s1  ;;  %p1623_p12 = scmp.lt.s32.totalorder %s1621_s26, %s1616_s2 }
  0x4c   : > { %p1619_p4 = pnand %p1617_p1, %p1590_p7 }
  0x4d   : > { %p1624_p2 = por %p1623_p12, %p1622_p3 }
  0x4e   : > { %p1620_p6 = pneg %p1619_p4 }
  0x50   : > { %p1625_p13 = pnand %p1624_p2, %p1620_p6 }
  0x52   : > { %1628 = shalt.err (!%p1625_p13)
}
  0x53   : > { %s1629_s5 = scalar_lea.vmem %s1883_s13, 1024  ;;  %s1724_s6 = smov [#allocation5]  }
  0x54   : > { %p1630_p0 = scmp.ne.s32.totalorder %s1883_s13, %s1629_s5  ;;  %s1634_s7 = sshll.u32 %s1724_s6, 4  ;;  %s1635_s7 = int_to_ptr.vmem [resolvable:$false] %s1634_s7 }
  0x55   : > { %s1636_s8 = scalar_lea.vmem %s1635_s7, 2048  ;;  %p1637_p10 = scmp.lt.s32.totalorder %s1883_s13, %s1635_s7 }
  0x56   : > { %p1632_p5 = pnand %p1630_p0, %p1590_p7  ;;  %p1638_p1 = scmp.lt.s32.totalorder %s1636_s8, %s1629_s5 }
  0x58   : > { %p1633_p9 = pneg %p1632_p5  ;;  %p1639_p4 = por %p1638_p1, %p1637_p10 }
  0x5a   : > { %p1640_p3 = pnand %p1639_p4, %p1633_p9 }
  0x5c   : > { %1643 = shalt.err (!%p1640_p3)
}
  0x5d   : > { %s1725_s2 = smov 128   ;;  %s1726_s12 = smov 8  }
  0x5e   : > { %1334 = dma.hbm_to_vmem [thread:$0]  (!%p1842_p11), %s1881_s25, 1024, %s1883_s13, %s1885_s0, %s1725_s2, %s1725_s2, %s1726_s12  }
  0x5f   : > { %221 = sbr.rel (%p1793_p8) target bundleno = 480 (0x1e0), region = 36  ;;  %s1913_s14 = sand.u32 (!%p1793_p8), 1, %s1708_s16  }
  0x60   : > { %s1220_s20 = sshll.u32 (!%p1793_p8), %s1913_s14, 5  ;;  %s224_s11 = scalar_lea.sflag (!%p1793_p8), [#allocation3], %s1913_s14 }
  0x61   : > { %s1917_s24 = scalar_lea.vmem (!%p1793_p8), [#allocation2], %s1220_s20  ;;  %p2122_p7 = scmp.ne.s32.totalorder (!%p1793_p8), %s2113_s21, 0 }
  0x64   : > { %1687 = dma.done.wait (%p2122_p7), %s224_s11, 512  }
  0x65   : > { %1689 = vsyncadd (%p2122_p7), %s224_s11, 4294966784  ;;  %s232_s0 = sand.u32 1, %s1774_s19   ;;  %s1221_s23 = sshll.u32 %s1913_s14, 6 }
  0x66   : > { %s233_s28 = scalar_lea.sflag [#allocation6], %s232_s0  ;;  %s1925_s13 = scalar_lea.vmem [#allocation5], %s1221_s23 }
  0x67   : > { %1691 = dma.done.wait (%p2122_p7), %s233_s28, 1024  }
  0x68   : > { %1693 = vsyncadd (%p2122_p7), %s233_s28, 4294966272  ;;  %p2123_p8 = scmp.eq.s32.totalorder %s1774_s19, 0 }
  0x6a   : > { %1695 = dma.done.wait (%p2123_p8), [#allocation6], 8192   ;;  %p2124_p11 = pmov %p2123_p8 }
  0x6b   : > { %v1382_v0 = vld [vmem:[#allocation7 + $0xe4] ss:$16 sps:$4 sm:$0xff]   ;;  %v1384_v1 = vld [vmem:[#allocation7 + $0xe0] ss:$16 sps:$4 sm:$0xff]   ;;  %v1402_v7 = vld [vmem:[#allocation7 + $0xec] ss:$16 sps:$4 sm:$0xff]  }
  0x6c   : > { %1697 = vsyncadd (%p2124_p11), [#allocation6], 4294959104  ;;  %722 = vmatprep.subr.bf16.mxu0 %v1382_v0  ;;  %v1385_v2 = vld [vmem:[#allocation7 + $0xc4] ss:$16 sps:$4 sm:$0xff]   ;;  %v1387_v3 = vld [vmem:[#allocation7 + $0xc0] ss:$16 sps:$4 sm:$0xff]   ;;  %795 = vmatprep.subr.bf16.mxu1 %v1402_v7 }
  0x6d   : > { %723 = vmatpush1.bf16.msra.mxu0 %v1384_v1  ;;  %v1388_v4 = vld [vmem:[#allocation7 + $0xa4] ss:$16 sps:$4 sm:$0xff]   ;;  %v1390_v5 = vld [vmem:[#allocation7 + $0xa0] ss:$16 sps:$4 sm:$0xff]   ;;  %v1405_v8 = vld [vmem:[#allocation7 + $0xe8] ss:$16 sps:$4 sm:$0xff]  }
  0x6e   : > { %724 = vmatprep.subr.bf16.mxu0 %v1385_v2  ;;  %v1391_v6 = vld [vmem:[#allocation7 + $0x84] ss:$16 sps:$4 sm:$0xff]   ;;  %v1393_v9 = vld [vmem:[#allocation7 + $0x80] ss:$16 sps:$4 sm:$0xff]   ;;  %796 = vmatpush1.bf16.msra.mxu1 %v1405_v8  ;;  %v1408_v11 = vld [vmem:[#allocation7 + $0xcc] ss:$16 sps:$4 sm:$0xff]  }
  0x6f   : > { %v1394_v10 = vld [vmem:[#allocation7 + $0x64] ss:$16 sps:$4 sm:$0xff]   ;;  %v1411_v12 = vld [vmem:[#allocation7 + $0xc8] ss:$16 sps:$4 sm:$0xff]   ;;  %797 = vmatprep.subr.bf16.mxu1 %v1408_v11  ;;  %v1396_v13 = vld [vmem:[#allocation7 + $0x60] ss:$16 sps:$4 sm:$0xff]  }
  0x70   : > { %v1397_v14 = vld [vmem:[#allocation7 + $0x44] ss:$16 sps:$4 sm:$0xff]   ;;  %v1414_v15 = vld [vmem:[#allocation7 + $0xac] ss:$16 sps:$4 sm:$0xff]   ;;  %v1417_v16 = vld [vmem:[#allocation7 + $0xa8] ss:$16 sps:$4 sm:$0xff]  }
  0x71   : > { %725 = vmatpush1.bf16.msra.mxu0 %v1387_v3  ;;  %v1420_v17 = vld [vmem:[#allocation7 + $0x8c] ss:$16 sps:$4 sm:$0xff]   ;;  %v1399_v18 = vld [vmem:[#allocation7 + $0x40] ss:$16 sps:$4 sm:$0xff]   ;;  %v1400_v19 = vld [vmem:[#allocation7 + $0x24] ss:$16 sps:$4 sm:$0xff]  }
  0x72   : > { %726 = vmatprep.subr.bf16.mxu0 %v1388_v4  ;;  %798 = vmatpush1.bf16.msra.mxu1 %v1411_v12  ;;  %v1423_v20 = vld [vmem:[#allocation7 + $0x88] ss:$16 sps:$4 sm:$0xff]   ;;  %v1426_v21 = vld [vmem:[#allocation7 + $0x6c] ss:$16 sps:$4 sm:$0xff]   ;;  %v1404_v22 = vld [vmem:[#allocation7 + $0x20] ss:$16 sps:$4 sm:$0xff]  }
  0x73   : > { %799 = vmatprep.subr.bf16.mxu1 %v1414_v15  ;;  %v1406_v23 = vld [vmem:[#allocation7 + $0x4] ss:$16 sps:$4 sm:$0xff]   ;;  %v1429_v24 = vld [vmem:[#allocation7 + $0x68] ss:$16 sps:$4 sm:$0xff]   ;;  %v1432_v25 = vld [vmem:[#allocation7 + $0x4c] ss:$16 sps:$4 sm:$0xff]  }
  0x74   : > { %v1410_v26 = vld [vmem:[#allocation7] ss:$16 sps:$4 sm:$0xff]   ;;  %v1412_v27 = vld [vmem:[#allocation7 + $0x1e4] ss:$16 sps:$4 sm:$0xff]   ;;  %v1435_v28 = vld [vmem:[#allocation7 + $0x48] ss:$16 sps:$4 sm:$0xff]  }
  0x75   : > { %727 = vmatpush1.bf16.msra.mxu0 %v1390_v5  ;;  %v1438_v29 = vld [vmem:[#allocation7 + $0x2c] ss:$16 sps:$4 sm:$0xff]   ;;  %v1416_v30 = vld [vmem:[#allocation7 + $0x1e0] ss:$16 sps:$4 sm:$0xff]   ;;  %v1418_v31 = vld [vmem:[#allocation7 + $0x1c4] ss:$16 sps:$4 sm:$0xff]  }
  0x76   : > { %728 = vmatprep.subr.bf16.mxu0 %v1391_v6  ;;  %800 = vmatpush1.bf16.msra.mxu1 %v1417_v16  ;;  %v1441_v32 = vld [vmem:[#allocation7 + $0x28] ss:$16 sps:$4 sm:$0xff]   ;;  %v1444_v33 = vld [vmem:[#allocation7 + $0xc] ss:$16 sps:$4 sm:$0xff]   ;;  %v1422_v34 = vld [vmem:[#allocation7 + $0x1c0] ss:$16 sps:$4 sm:$0xff]   ;;  %v382_v16 = vlaneseq }
  0x77   : > { %801 = vmatprep.subr.bf16.mxu1 %v1420_v17  ;;  %v1424_v35 = vld [vmem:[#allocation7 + $0x1a4] ss:$16 sps:$4 sm:$0xff]   ;;  %v1939_v37 = vld [vmem:[%s1925_s13 + $0x8] sm:$0xff]  ;;  %v1428_v41 = vld [vmem:[#allocation7 + $0x1a0] ss:$16 sps:$4 sm:$0xff]   ;;  %s1223_s26 = sshll.u32 %s1913_s14, 3 }
  0x78   : > { %v1936_v36 = vld [vmem:[%s1925_s13] sm:$0xff]  ;;  %v1447_v38 = vld [vmem:[#allocation7 + $0x8] ss:$16 sps:$4 sm:$0xff]   ;;  %v1450_v40 = vld [vmem:[#allocation7 + $0x1ec] ss:$16 sps:$4 sm:$0xff]   ;;  %v1971_v17 = vshrl.u32 %v382_v16, 7 }
  0x79   : > { %729 = vmatpush1.bf16.msra.mxu0 %v1393_v9  ;;  %v288_v39 = vpack.c.bf16 %v1939_v37, %v1936_v36  ;;  %v1430_v42 = vld [vmem:[#allocation7 + $0x184] ss:$16 sps:$4 sm:$0xff]   ;;  %v1453_v43 = vld [vmem:[#allocation7 + $0x1e8] ss:$16 sps:$4 sm:$0xff]   ;;  %v1456_v44 = vld [vmem:[#allocation7 + $0x1cc] ss:$16 sps:$4 sm:$0xff]  }
  0x7a   : > { %730 = vmatprep.subr.bf16.mxu0 %v1394_v10  ;;  %802 = vmatpush1.bf16.msra.mxu1 %v1423_v20  ;;  %v1434_v45 = vld [vmem:[#allocation7 + $0x180] ss:$16 sps:$4 sm:$0xff]   ;;  %v1436_v46 = vld [vmem:[#allocation7 + $0x164] ss:$16 sps:$4 sm:$0xff]   ;;  %v1459_v47 = vld [vmem:[#allocation7 + $0x1c8] ss:$16 sps:$4 sm:$0xff]  }
  0x7b   : > { %803 = vmatprep.subr.bf16.mxu1 %v1426_v21  ;;  %754 = vmatprep.mubr.bf16.mxu0 %v288_v39  ;;  %v1461_v48 = vld [vmem:[#allocation7 + $0x1ac] ss:$16 sps:$4 sm:$0xff]   ;;  %v1440_v49 = vld [vmem:[#allocation7 + $0x160] ss:$16 sps:$4 sm:$0xff]   ;;  %v1442_v50 = vld [vmem:[#allocation7 + $0x144] ss:$16 sps:$4 sm:$0xff]  }
  0x7c   : > { %827 = vmatprep.mubr.bf16.mxu1 %v288_v39  ;;  %v1463_v51 = vld [vmem:[#allocation7 + $0x1a8] ss:$16 sps:$4 sm:$0xff]   ;;  %v1464_v52 = vld [vmem:[#allocation7 + $0x18c] ss:$16 sps:$4 sm:$0xff]   ;;  %v1446_v53 = vld [vmem:[#allocation7 + $0x140] ss:$16 sps:$4 sm:$0xff]  }
  0x7d   : > { %731 = vmatpush1.bf16.msra.mxu0 %v1396_v13  ;;  %v1448_v54 = vld [vmem:[#allocation7 + $0x124] ss:$16 sps:$4 sm:$0xff]   ;;  %v1466_v55 = vld [vmem:[#allocation7 + $0x188] ss:$16 sps:$4 sm:$0xff]   ;;  %v1468_v56 = vld [vmem:[#allocation7 + $0x16c] ss:$16 sps:$4 sm:$0xff]  }
  0x7e   : > { %732 = vmatprep.subr.bf16.mxu0 %v1397_v14  ;;  %804 = vmatpush1.bf16.msra.mxu1 %v1429_v24  ;;  %v1452_v57 = vld [vmem:[#allocation7 + $0x120] ss:$16 sps:$4 sm:$0xff]   ;;  %v1454_v58 = vld [vmem:[#allocation7 + $0x104] ss:$16 sps:$4 sm:$0xff]   ;;  %v1470_v59 = vld [vmem:[#allocation7 + $0x168] ss:$16 sps:$4 sm:$0xff]  }
  0x7f   : > { %805 = vmatprep.subr.bf16.mxu1 %v1432_v25  ;;  %v1471_v60 = vld [vmem:[#allocation7 + $0x14c] ss:$16 sps:$4 sm:$0xff]   ;;  %v1458_v61 = vld [vmem:[#allocation7 + $0x100] ss:$16 sps:$4 sm:$0xff]   ;;  %v1473_v0 = vld [vmem:[#allocation7 + $0x148] ss:$16 sps:$4 sm:$0xff]  }
  0x80   : > { %v1944_v62 = vld [vmem:[%s1925_s13 + $0x10] sm:$0xff]  ;;  %v1947_v63 = vld [vmem:[%s1925_s13 + $0x18] sm:$0xff]  ;;  %v1460_v2 = vld [vmem:[%s1917_s24] sm:$0xff]   ;;  %v388_v25 = vsub.s32 1, %v1971_v17  ;;  %v392_v16 = vsub.s32 2, %v1971_v17  ;;  %vm1077_vm0 = vcmask 1041409  }
  0x81   : > { %733 = vmatpush1.bf16.msra.mxu0 %v1399_v18  ;;  %v1475_v1 = vld [vmem:[#allocation7 + $0x12c] ss:$16 sps:$4 sm:$0xff]   ;;  %v289_v3 = vpack.c.bf16 %v1947_v63, %v1944_v62  ;;  %v1477_v4 = vld [vmem:[#allocation7 + $0x128] ss:$16 sps:$4 sm:$0xff]   ;;  %v1953_v6 = vld [vmem:[%s1925_s13 + $0x20] sm:$0xff]  ;;  %v384_v18 = vsub.s32 0, %v1971_v17 }
  0x82   : > { %734 = vmatprep.subr.bf16.mxu0 %v1400_v19  ;;  %806 = vmatpush1.bf16.msra.mxu1 %v1435_v28  ;;  %v1478_v5 = vld [vmem:[#allocation7 + $0x10c] ss:$16 sps:$4 sm:$0xff]   ;;  %v1480_v8 = vld [vmem:[#allocation7 + $0x108] ss:$16 sps:$4 sm:$0xff]   ;;  %v1962_v11 = vld [vmem:[%s1925_s13 + $0x30] sm:$0xff]  ;;  %vm1079_vm1 = vcmask 1042434  }
  0x83   : > { %807 = vmatprep.subr.bf16.mxu1 %v1438_v29  ;;  %v1956_v7 = vld [vmem:[%s1925_s13 + $0x28] sm:$0xff]  ;;  %v1965_v12 = vld [vmem:[%s1925_s13 + $0x38] sm:$0xff]  ;;  %v1474_v13 = vld [vmem:[%s1917_s24 + $0x10] sm:$0xff]   ;;  %vm1081_vm2 = vcmask 1043459   ;;  %vm1083_vm3 = vcmask 1044484   ;;  %vm1085_vm4 = vcmask 1045509  }
  0x84   : > { %v1467_v9 = vld [vmem:[%s1917_s24 + $0x8] sm:$0xff]   ;;  %v290_v10 = vpack.c.bf16 %v1956_v7, %v1953_v6  ;;  %v291_v14 = vpack.c.bf16 %v1965_v12, %v1962_v11  ;;  %v1481_v15 = vld [vmem:[%s1917_s24 + $0x18] sm:$0xff]   ;;  %v1977_v19 = vld [vmem:[%s2106_s3] sm:$0xf]  ;;  %vm1087_vm5 = vcmask 1046534   ;;  %s1309_s29 = sshll.u32 %s1774_s19, 7 }
  0x85   : > { %735 = vmatpush1.bf16.msra.mxu0 %v1404_v22  ;;  %v1980_v20 = vrot.slane %v1977_v19, %v384_v18  ;;  %v1986_v29 = vrot.slane %v1977_v19, %v388_v25  ;;  %s269_s30 = scalar_lea.vmem [#allocation8], %s1223_s26  ;;  %vm1089_vm6 = vcmask 1047559   ;;  %s2066_s8 = scalar_lea.hbm %s2107_s4, %s1309_s29 }
  0x86   : > { %736 = vmatprep.subr.bf16.mxu0 %v1406_v23  ;;  %808 = vmatpush1.bf16.msra.mxu1 %v1441_v32  ;;  %s1107_s5 = sshll.u32 %s269_s30, 4  ;;  %s1094_s2 = scalar_lea.sflag [#allocation4], %s1913_s14  ;;  %s1108_s5 = int_to_ptr.vmem [resolvable:$true] %s1107_s5 }
  0x87   : > { %809 = vmatprep.subr.bf16.mxu1 %v1444_v33  ;;  %s1644_s12 = scalar_lea.vmem %s1108_s5, 128  ;;  %p2125_p12 = scmp.ne.s32.totalorder %s2119_s10, 0 }
  0x88   : > { %p1645_p6 = scmp.ne.s32.totalorder %s1108_s5, %s1644_s12  ;;  %s1727_s19 = smov [#allocation8]  }
  0x89   : > { %737 = vmatpush1.bf16.msra.mxu0 %v1410_v26  ;;  %s1648_s20 = sshll.u32 %s1727_s19, 4  ;;  %s1649_s20 = int_to_ptr.vmem [resolvable:$false] %s1648_s20 }
  0x8a   : > { %738 = vmatprep.subr.bf16.mxu0 %v1412_v27  ;;  %810 = vmatpush1.bf16.msra.mxu1 %v1447_v38  ;;  %p1646_p2 = pnand %p1645_p6, %p2125_p12  ;;  %s1650_s11 = scalar_lea.vmem %s1649_s20, 256 }
  0x8b   : > { %811 = vmatprep.subr.bf16.mxu1 %v1450_v40  ;;  %p1651_p0 = scmp.lt.s32.totalorder %s1108_s5, %s1649_s20  ;;  %p1652_p5 = scmp.lt.s32.totalorder %s1650_s11, %s1644_s12 }
  0x8c   : > { %p1647_p13 = pneg %p1646_p2 }
  0x8d   : > { %739 = vmatpush2.bf16.msra.mxu0 %v1416_v30  ;;  %p1653_p9 = por %p1652_p5, %p1651_p0 }
  0x8e   : > { %740 = vmatprep.subr.bf16.mxu0 %v1418_v31  ;;  %812 = vmatpush2.bf16.msra.mxu1 %v1453_v43 }
  0x8f   : > { %813 = vmatprep.subr.bf16.mxu1 %v1456_v44  ;;  %p1654_p10 = pnand %p1653_p9, %p1647_p13 }
  0x91   : > { %741 = vmatpush2.bf16.msra.mxu0 %v1422_v34 }
  0x92   : > { %742 = vmatprep.subr.bf16.mxu0 %v1424_v35  ;;  %814 = vmatpush2.bf16.msra.mxu1 %v1459_v47 }
  0x93   : > { %815 = vmatprep.subr.bf16.mxu1 %v1461_v48 }
  0x95   : > { %743 = vmatpush2.bf16.msra.mxu0 %v1428_v41 }
  0x96   : > { %744 = vmatprep.subr.bf16.mxu0 %v1430_v42  ;;  %816 = vmatpush2.bf16.msra.mxu1 %v1463_v51 }
  0x97   : > { %817 = vmatprep.subr.bf16.mxu1 %v1464_v52 }
  0x99   : > { %745 = vmatpush2.bf16.msra.mxu0 %v1434_v45 }
  0x9a   : > { %746 = vmatprep.subr.bf16.mxu0 %v1436_v46  ;;  %818 = vmatpush2.bf16.msra.mxu1 %v1466_v55 }
  0x9b   : > { %819 = vmatprep.subr.bf16.mxu1 %v1468_v56 }
  0x9d   : > { %747 = vmatpush2.bf16.msra.mxu0 %v1440_v49 }
  0x9e   : > { %748 = vmatprep.subr.bf16.mxu0 %v1442_v50  ;;  %820 = vmatpush2.bf16.msra.mxu1 %v1470_v59 }
  0x9f   : > { %821 = vmatprep.subr.bf16.mxu1 %v1471_v60 }
  0xa1   : > { %749 = vmatpush2.bf16.msra.mxu0 %v1446_v53 }
  0xa2   : > { %750 = vmatprep.subr.bf16.mxu0 %v1448_v54  ;;  %822 = vmatpush2.bf16.msra.mxu1 %v1473_v0 }
  0xa3   : > { %823 = vmatprep.subr.bf16.mxu1 %v1475_v1 }
  0xa5   : > { %751 = vmatpush2.bf16.msra.mxu0 %v1452_v57 }
  0xa6   : > { %752 = vmatprep.subr.bf16.mxu0 %v1454_v58  ;;  %824 = vmatpush2.bf16.msra.mxu1 %v1477_v4 }
  0xa7   : > { %825 = vmatprep.subr.bf16.mxu1 %v1478_v5 }
  0xa9   : > { %753 = vmatpush2.bf16.msra.mxu0 %v1458_v61 }
  0xaa   : > { %826 = vmatpush2.bf16.msra.mxu1 %v1480_v8 }
  0xac   : > { %755 = vmatmul.mubr.bf16.vlgmr.msra.gmra.mxu0 %v1460_v2 }
  0xad   : > { %764 = vmatprep.mubr.bf16.mxu0 %v289_v3  ;;  %828 = vmatmul.mubr.bf16.vlgmr.msra.gmra.mxu1 %v1460_v2 }
  0xae   : > { %837 = vmatprep.mubr.bf16.mxu1 %v289_v3 }
  0xb4   : > { %765 = vmatmul.mubr.bf16.gmra.mxu0 %v1467_v9 }
  0xb5   : > { %774 = vmatprep.mubr.bf16.mxu0 %v290_v10  ;;  %838 = vmatmul.mubr.bf16.gmra.mxu1 %v1467_v9  ;;  %v396_v9 = vsub.s32 3, %v1971_v17 }
  0xb6   : > { %847 = vmatprep.mubr.bf16.mxu1 %v290_v10 }
  0xbc   : > { %775 = vmatmul.mubr.bf16.gmra.mxu0 %v1474_v13 }
  0xbd   : > { %784 = vmatprep.mubr.bf16.mxu0 %v291_v14  ;;  %848 = vmatmul.mubr.bf16.gmra.mxu1 %v1474_v13 }
  0xbe   : > { %857 = vmatprep.mubr.bf16.mxu1 %v291_v14 }
  0xc4   : > { %785 = vmatmul.mubr.bf16.gmra.mxu0 %v1481_v15 }
  0xc5   : > { %858 = vmatmul.mubr.bf16.gmra.mxu1 %v1481_v15 }
 0x16c   : > { %v756_v21 = vpop.f32.mrf.mxu0 }
 0x16d   : > { %v757_v22 = vadd.f32 %v756_v21, %v1980_v20  ;;  %v1989_v33 = vpop.f32.mrf.mxu1 }
 0x16e   : > { %v758_v23 = vpop.f32.mrf.mxu0 }
 0x16f   : > { %v1292_v24 = vmul.f32 -1.442695, %v757_v22  ;;  %v759_v35 = vadd.f32 %v758_v23, %v1986_v29  ;;  %v1992_v39 = vpop.f32.mrf.mxu1 }
 0x170   : > { %v760_v26 = vpop.f32.mrf.mxu0 }
 0x171   : > { %1482 = vpow2.f32 %v1292_v24  ;;  %v761_v27 = vadd.f32 %v760_v26, %v1980_v20  ;;  %v1995_v42 = vpop.f32.mrf.mxu1  ;;  %v1300_v44 = vmul.f32 -1.442695, %v759_v35  ;;  %v2017_v24 = vrot.slane %v1977_v19, %v396_v9 }
 0x172   : > { %v762_v28 = vpop.f32.mrf.mxu0 }
 0x173   : > { %v1293_v30 = vmul.f32 -1.442695, %v761_v27  ;;  %v1997_v46 = vpop.f32.mrf.mxu1  ;;  %v763_v47 = vadd.f32 %v762_v28, %v1986_v29  ;;  %v2021_v28 = vrot.slane %v1977_v19, %v392_v16  ;;  %v832_v35 = vadd.f32 %v1992_v39, %v2017_v24 }
 0x174   : > { %v766_v31 = vpop.f32.mrf.mxu0 }
 0x175   : > { %1484 = vpow2.f32 %v1293_v30  ;;  %v767_v32 = vadd.f32 %v766_v31, %v1980_v20  ;;  %v2001_v50 = vpop.f32.mrf.mxu1  ;;  %v1301_v56 = vmul.f32 -1.442695, %v763_v47  ;;  %v830_v19 = vadd.f32 %v1989_v33, %v2021_v28 }
 0x176   : > { %v768_v34 = vpop.f32.mrf.mxu0  ;;  %v834_v33 = vadd.f32 %v1995_v42, %v2021_v28  ;;  %v840_v42 = vadd.f32 %v2001_v50, %v2021_v28 }
 0x177   : > { %v1294_v38 = vmul.f32 -1.442695, %v767_v32  ;;  %v2003_v55 = vpop.f32.mrf.mxu1  ;;  %v769_v57 = vadd.f32 %v768_v34, %v1986_v29 }
 0x178   : > { %v770_v40 = vpop.f32.mrf.mxu0 }
 0x179   : > { %1486 = vpow2.f32 %v1294_v38  ;;  %v771_v41 = vadd.f32 %v770_v40, %v1980_v20  ;;  %v2007_v2 = vpop.f32.mrf.mxu1  ;;  %v1302_v3 = vmul.f32 -1.442695, %v769_v57 }
 0x17a   : > { %v772_v43 = vpop.f32.mrf.mxu0  ;;  %v844_v16 = vadd.f32 %v2007_v2, %v2021_v28 }
 0x17b   : > { %v1295_v45 = vmul.f32 -1.442695, %v771_v41  ;;  %v773_v4 = vadd.f32 %v772_v43, %v1986_v29  ;;  %v2013_v18 = vpop.f32.mrf.mxu1 }
 0x17c   : > { %v776_v48 = vpop.f32.mrf.mxu0 }
 0x17d   : > { %1488 = vpow2.f32 %v1295_v45  ;;  %v777_v49 = vadd.f32 %v776_v48, %v1980_v20  ;;  %v1303_v21 = vmul.f32 -1.442695, %v773_v4  ;;  %v2023_v30 = vpop.f32.mrf.mxu1 }
 0x17e   : > { %v1483_v51 = vpop.eup %1482  ;;  %v778_v52 = vpop.f32.mrf.mxu0  ;;  %1490 = vpow2.f32 %v1300_v44 }
 0x17f   : > { %v892_v53 = vadd.f32 1.0, %v1483_v51  ;;  %v1296_v54 = vmul.f32 -1.442695, %v777_v49  ;;  %v779_v23 = vadd.f32 %v778_v52, %v1986_v29  ;;  %v851_v43 = vpop.f32.mrf.mxu1  ;;  %v836_v51 = vadd.f32 %v1997_v46, %v2017_v24 }
 0x180   : > { %v780_v58 = vpop.f32.mrf.mxu0 }
 0x181   : > { %1492 = vrcp.f32 %v892_v53  ;;  %v781_v59 = vadd.f32 %v780_v58, %v1980_v20  ;;  %v1304_v34 = vmul.f32 -1.442695, %v779_v23 }
 0x182   : > { %v1485_v60 = vpop.eup %1484  ;;  %1494 = vpow2.f32 %v1296_v54  ;;  %v782_v61 = vpop.f32.mrf.mxu0 }
 0x183   : > { %v893_v0 = vadd.f32 1.0, %v1485_v60  ;;  %v1297_v1 = vmul.f32 -1.442695, %v781_v59  ;;  %1496 = vpow2.f32 %v1301_v56  ;;  %v783_v32 = vadd.f32 %v782_v61, %v1986_v29  ;;  %v853_v56 = vpop.f32.mrf.mxu1 }
 0x184   : > { %v786_v5 = vpop.f32.mrf.mxu0  ;;  %v842_v59 = vadd.f32 %v2003_v55, %v2017_v24 }
 0x185   : > { %1498 = vrcp.f32 %v893_v0  ;;  %v787_v8 = vadd.f32 %v786_v5, %v1980_v20  ;;  %v1305_v45 = vmul.f32 -1.442695, %v783_v32  ;;  %v855_v5 = vpop.f32.mrf.mxu1  ;;  %v850_v32 = vadd.f32 %v2023_v30, %v2021_v28 }
 0x186   : > { %v1487_v10 = vpop.eup %1486  ;;  %1500 = vpow2.f32 %v1297_v1  ;;  %v788_v13 = vpop.f32.mrf.mxu0 }
 0x187   : > { %v894_v14 = vadd.f32 1.0, %v1487_v10  ;;  %v1298_v15 = vmul.f32 -1.442695, %v787_v8  ;;  %1502 = vpow2.f32 %v1302_v3  ;;  %v789_v48 = vadd.f32 %v788_v13, %v1986_v29 }
 0x188   : > { %v790_v22 = vpop.f32.mrf.mxu0 }
 0x189   : > { %1504 = vrcp.f32 %v894_v14  ;;  %v791_v25 = vadd.f32 %v790_v22, %v1980_v20  ;;  %v1306_v61 = vmul.f32 -1.442695, %v789_v48 }
 0x18a   : > { %v1489_v26 = vpop.eup %1488  ;;  %1506 = vpow2.f32 %v1298_v15  ;;  %v792_v52 = vpop.f32.mrf.mxu0 }
 0x18b   : > { %v895_v27 = vadd.f32 1.0, %v1489_v26  ;;  %v1299_v17 = vmul.f32 -1.442695, %v791_v25  ;;  %v1491_v31 = vpop.eup %1490  ;;  %1508 = vpow2.f32 %v1303_v21  ;;  %v793_v46 = vadd.f32 %v792_v52, %v1986_v29  ;;  %v859_v21 = vpop.f32.mrf.mxu1 }
 0x18c   : > { %v940_v40 = vadd.f32 1.0, %v1491_v31  ;;  %v846_v29 = vadd.f32 %v2013_v18, %v2017_v24 }
 0x18d   : > { %1510 = vrcp.f32 %v895_v27  ;;  %v1307_v55 = vmul.f32 -1.442695, %v793_v46  ;;  %v852_v27 = vadd.f32 %v851_v43, %v2017_v24  ;;  %v861_v18 = vpop.f32.mrf.mxu1  ;;  %v854_v43 = vadd.f32 %v853_v56, %v2021_v28 }
 0x18e   : > { %v1493_v38 = vpop.eup %1492  ;;  %1512 = vpow2.f32 %v1299_v17  ;;  %v862_v52 = vadd.f32 %v861_v18, %v2017_v24 }
 0x18f   : > { %v1495_v20 = vpop.eup %1494  ;;  %v964_v41 = vmul.f32 %v1493_v38, %v832_v35  ;;  %1514 = vpow2.f32 %v1304_v34 }
 0x190   : > { %v896_v44 = vadd.f32 1.0, %v1495_v20  ;;  %v1497_v47 = vpop.eup %1496 }
 0x191   : > { %v972_v49 = vadd.f32 %v964_v41, %v830_v19  ;;  %v941_v57 = vadd.f32 1.0, %v1497_v47  ;;  %v863_v41 = vpop.f32.mrf.mxu1 }
 0x192   : > { %v1499_v39 = vpop.eup %1498  ;;  %1516 = vrcp.f32 %v896_v44 }
 0x193   : > { %v1501_v53 = vpop.eup %1500  ;;  %1518 = vrcp.f32 %v940_v40  ;;  %v965_v54 = vmul.f32 %v1499_v39, %v836_v51  ;;  %v856_v40 = vadd.f32 %v855_v5, %v2017_v24  ;;  %v864_v5 = vadd.f32 %v863_v41, %v2021_v28 }
 0x194   : > { %v897_v58 = vadd.f32 1.0, %v1501_v53  ;;  %1520 = vpow2.f32 %v1305_v45  ;;  %v1503_v60 = vpop.eup %1502 }
 0x195   : > { %1522 = vtanh.f32 %v972_v49  ;;  %v973_v0 = vadd.f32 %v965_v54, %v834_v33  ;;  %v942_v8 = vadd.f32 1.0, %v1503_v60  ;;  %v865_v33 = vpop.f32.mrf.mxu1 }
 0x196   : > { %v1505_v1 = vpop.eup %1504  ;;  %1524 = vrcp.f32 %v897_v58  ;;  %v860_v58 = vadd.f32 %v859_v21, %v2021_v28 }
 0x197   : > { %v1507_v3 = vpop.eup %1506  ;;  %1526 = vtanh.f32 %v973_v0  ;;  %v966_v4 = vmul.f32 %v1505_v1, %v842_v59  ;;  %v866_v0 = vadd.f32 %v865_v33, %v2017_v24 }
 0x198   : > { %1528 = vrcp.f32 %v941_v57  ;;  %v898_v9 = vadd.f32 1.0, %v1507_v3  ;;  %v1509_v10 = vpop.eup %1508 }
 0x199   : > { %1530 = vpow2.f32 %v1306_v61  ;;  %v974_v13 = vadd.f32 %v966_v4, %v840_v42  ;;  %v943_v23 = vadd.f32 1.0, %v1509_v10 }
 0x19a   : > { %v1511_v14 = vpop.eup %1510  ;;  %1532 = vrcp.f32 %v898_v9 }
 0x19b   : > { %v1513_v15 = vpop.eup %1512  ;;  %1534 = vtanh.f32 %v974_v13  ;;  %v967_v50 = vmul.f32 %v1511_v14, %v846_v29 }
 0x19c   : > { %1536 = vrcp.f32 %v942_v8  ;;  %v899_v22 = vadd.f32 1.0, %v1513_v15  ;;  %v1515_v26 = vpop.eup %1514 }
 0x19d   : > { %1538 = vpow2.f32 %v1307_v55  ;;  %v975_v25 = vadd.f32 %v967_v50, %v844_v16  ;;  %v944_v38 = vadd.f32 1.0, %v1515_v26 }
 0x19e   : > { %1540 = vrcp.f32 %v899_v22 }
 0x19f   : > { %v1517_v17 = vpop.eup %1516  ;;  %1542 = vtanh.f32 %v975_v25 }
 0x1a0   : > { %v1519_v31 = vpop.eup %1518  ;;  %v968_v34 = vmul.f32 %v1517_v17, %v852_v27  ;;  %1544 = vrcp.f32 %v943_v23 }
 0x1a1   : > { %v1521_v2 = vpop.eup %1520 }
 0x1a2   : > { %v1523_v35 = vpop.eup %1522  ;;  %v976_v20 = vadd.f32 %v968_v34, %v850_v32  ;;  %v945_v51 = vadd.f32 1.0, %v1521_v2 }
 0x1a3   : > { %v1525_v19 = vpop.eup %1524  ;;  %v988_v48 = vsub.f32 %v1936_v36, %v1523_v35 }
 0x1a4   : > { %v1527_v44 = vpop.eup %1526  ;;  %1546 = vtanh.f32 %v976_v20  ;;  %v969_v45 = vmul.f32 %v1525_v19, %v856_v40 }
 0x1a5   : > { %v1529_v47 = vpop.eup %1528  ;;  %v989_v30 = vsub.f32 %v1939_v37, %v1527_v44  ;;  %1548 = vrcp.f32 %v944_v38  ;;  %v996_v60 = vmul.f32 %v1519_v31, %v988_v48 }
 0x1a6   : > { %v1531_v49 = vpop.eup %1530  ;;  %v977_v39 = vadd.f32 %v969_v45, %v854_v43 }
 0x1a7   : > { %v1533_v53 = vpop.eup %1532  ;;  %v997_v57 = vmul.f32 %v1529_v47, %v989_v30  ;;  %v946_v37 = vadd.f32 1.0, %v1531_v49  ;;  %v1004_v9 = vadd.f32 %v1523_v35, %v996_v60 }
 0x1a8   : > { %v1535_v54 = vpop.eup %1534  ;;  %1550 = vtanh.f32 %v977_v39  ;;  %v970_v56 = vmul.f32 %v1533_v53, %v862_v52 }
 0x1a9   : > { %v1537_v59 = vpop.eup %1536  ;;  %v990_v36 = vsub.f32 %v1944_v62, %v1535_v54  ;;  %1552 = vrcp.f32 %v945_v51  ;;  %v1005_v4 = vadd.f32 %v1527_v44, %v997_v57  ;;  %v1012_v16 = vrot.slane %v1004_v9, 4 }
 0x1aa   : > { %v1539_v61 = vpop.eup %1538  ;;  %v978_v46 = vadd.f32 %v970_v56, %v860_v58 }
 0x1ab   : > { %v1541_v1 = vpop.eup %1540  ;;  %v998_v3 = vmul.f32 %v1537_v59, %v990_v36  ;;  %v947_v62 = vadd.f32 1.0, %v1539_v61  ;;  %v1018_v15 = vrot.slane %v1005_v4, 4 }
 0x1ac   : > { %v1543_v42 = vpop.eup %1542  ;;  %1554 = vtanh.f32 %v978_v46  ;;  %v971_v8 = vmul.f32 %v1541_v1, %v866_v0 }
 0x1ad   : > { %v1006_v10 = vadd.f32 %v1535_v54, %v998_v3  ;;  %v991_v55 = vsub.f32 %v1947_v63, %v1543_v42  ;;  %v1545_v13 = vpop.eup %1544  ;;  %1556 = vrcp.f32 %v946_v37  ;;  %v1019_v25 = vadd.f32 %v1018_v15, %v1005_v4 }
 0x1ae   : > { %v979_v29 = vadd.f32 %v971_v8, %v864_v5  ;;  %v1013_v63 = vadd.f32 %v1012_v16, %v1004_v9 }
 0x1af   : > { %v999_v14 = vmul.f32 %v1545_v13, %v991_v55  ;;  %v1024_v50 = vrot.slane %v1006_v10, 4  ;;  %v1020_v2 = vrot.slane %v1019_v25, 2 }
 0x1b0   : > { %1558 = vtanh.f32 %v979_v29  ;;  %v1014_v40 = vrot.slane %v1013_v63, 2 }
 0x1b1   : > { %v1547_v24 = vpop.eup %1546  ;;  %v1007_v21 = vadd.f32 %v1543_v42, %v999_v14  ;;  %1560 = vrcp.f32 %v947_v62  ;;  %v1025_v17 = vadd.f32 %v1024_v50, %v1006_v10  ;;  %v1021_v47 = vadd.f32 %v1020_v2, %v1019_v25 }
 0x1b2   : > { %v992_v22 = vsub.f32 %v1953_v6, %v1547_v24  ;;  %v1549_v28 = vpop.eup %1548  ;;  %v1015_v39 = vadd.f32 %v1014_v40, %v1013_v63 }
 0x1b3   : > { %v1030_v23 = vrot.slane %v1007_v21, 4  ;;  %v1026_v19 = vrot.slane %v1025_v17, 2  ;;  %v1022_v56 = vrot.slane %v1021_v47, 1 }
 0x1b4   : > { %v1000_v26 = vmul.f32 %v1549_v28, %v992_v22 }
 0x1b5   : > { %v1551_v27 = vpop.eup %1550  ;;  %v1031_v18 = vadd.f32 %v1030_v23, %v1007_v21  ;;  %v1023_v42 = vadd.f32 %v1022_v56, %v1021_v47 }
 0x1b6   : > { %v1008_v31 = vadd.f32 %v1547_v24, %v1000_v26  ;;  %v993_v32 = vsub.f32 %v1956_v7, %v1551_v27  ;;  %v1553_v34 = vpop.eup %1552  ;;  %v1027_v7 = vadd.f32 %v1026_v19, %v1025_v17 }
 0x1b7   : > { %v1032_v41 = vrot.slane %v1031_v18, 2  ;;  %v1062_v29 = vmul.f32 0.125, %v1023_v42 }
 0x1b8   : > { %v1036_v35 = vrot.slane %v1008_v31, 4  ;;  %v1001_v38 = vmul.f32 %v1553_v34, %v993_v32  ;;  %v1028_v61 = vrot.slane %v1027_v7, 1 }
 0x1b9   : > { %v1555_v20 = vpop.eup %1554  ;;  %v1033_v52 = vadd.f32 %v1032_v41, %v1031_v18 }
 0x1ba   : > { %v1037_v6 = vadd.f32 %v1036_v35, %v1008_v31  ;;  %v1009_v44 = vadd.f32 %v1551_v27, %v1001_v38  ;;  %v994_v43 = vsub.f32 %v1962_v11, %v1555_v20  ;;  %v1557_v45 = vpop.eup %1556  ;;  %v1016_v11 = vrot.slane %v1015_v39, 1 }
 0x1bb   : > { %v1034_v46 = vrot.slane %v1033_v52, 1  ;;  %v1029_v9 = vadd.f32 %v1028_v61, %v1027_v7 }
 0x1bc   : > { %v1038_v48 = vrot.slane %v1037_v6, 2  ;;  %v1042_v30 = vrot.slane %v1009_v44, 4  ;;  %v1002_v49 = vmul.f32 %v1557_v45, %v994_v43 }
 0x1bd   : > { %v1559_v51 = vpop.eup %1558  ;;  %v1035_v10 = vadd.f32 %v1034_v46, %v1033_v52  ;;  %v1063_v16 = vmul.f32 0.125, %v1029_v9 }
 0x1be   : > { %v1043_v53 = vadd.f32 %v1042_v30, %v1009_v44  ;;  %v1010_v33 = vadd.f32 %v1555_v20, %v1002_v49  ;;  %v995_v54 = vsub.f32 %v1965_v12, %v1559_v51  ;;  %v1561_v57 = vpop.eup %1560  ;;  %v1039_v58 = vadd.f32 %v1038_v48, %v1037_v6 }
 0x1bf   : > { %v1017_v12 = vadd.f32 %v1016_v11, %v1015_v39  ;;  %v1064_v28 = vmul.f32 0.125, %v1035_v10 }
 0x1c0   : > { %v1048_v59 = vrot.slane %v1010_v33, 4  ;;  %v1003_v60 = vmul.f32 %v1561_v57, %v995_v54  ;;  %v1044_v36 = vrot.slane %v1043_v53, 2  ;;  %v1040_v3 = vrot.slane %v1039_v58, 1 }
 0x1c1   : > { %v1061_v50 = vmul.f32 0.125, %v1017_v12 }
 0x1c2   : > { %v1011_v37 = vadd.f32 %v1559_v51, %v1003_v60  ;;  %v1045_v0 = vadd.f32 %v1044_v36, %v1043_v53  ;;  %v1049_v1 = vadd.f32 %v1048_v59, %v1010_v33  ;;  %v1041_v62 = vadd.f32 %v1040_v3, %v1039_v58 }
 0x1c3   : > { %v1078_v27 = vsel %vm1077_vm0, %v1062_v29, %v1061_v50 }
 0x1c4   : > { %v1046_v4 = vrot.slane %v1045_v0, 1  ;;  %v1050_v5 = vrot.slane %v1049_v1, 2  ;;  %v1054_v8 = vrot.slane %v1011_v37, 4  ;;  %v1065_v23 = vmul.f32 0.125, %v1041_v62 }
 0x1c5   : > { %v1080_v17 = vsel %vm1079_vm1, %v1063_v16, %v1078_v27 }
 0x1c6   : > { %v1051_v55 = vadd.f32 %v1050_v5, %v1049_v1  ;;  %v1055_v13 = vadd.f32 %v1054_v8, %v1011_v37  ;;  %v1047_v14 = vadd.f32 %v1046_v4, %v1045_v0  ;;  %v1082_v31 = vsel %vm1081_vm2, %v1064_v28, %v1080_v17 }
 0x1c7   : > { %v1084_v32 = vsel %vm1083_vm3, %v1065_v23, %v1082_v31 }
 0x1c8   : > { %v1052_v15 = vrot.slane %v1051_v55, 1  ;;  %v1056_v24 = vrot.slane %v1055_v13, 2  ;;  %v1066_v26 = vmul.f32 0.125, %v1047_v14 }
 0x1ca   : > { %v1053_v21 = vadd.f32 %v1052_v15, %v1051_v55  ;;  %v1057_v22 = vadd.f32 %v1056_v24, %v1055_v13  ;;  %v1086_v2 = vsel %vm1085_vm4, %v1066_v26, %v1084_v32 }
 0x1cc   : > { %v1058_v25 = vrot.slane %v1057_v22, 1  ;;  %v1067_v63 = vmul.f32 0.125, %v1053_v21 }
 0x1ce   : > { %v1059_v18 = vadd.f32 %v1058_v25, %v1057_v22  ;;  %v1088_v35 = vsel %vm1087_vm5, %v1067_v63, %v1086_v2 }
 0x1d0   : > { %v1068_v34 = vmul.f32 0.125, %v1059_v18 }
 0x1d2   : > { %v1090_v38 = vsel %vm1089_vm6, %v1068_v34, %v1088_v35 }
 0x1d3   : > { %1092 = vst [vmem:[%s269_s30] sm:$0xff] %v1090_v38 }
 0x1d4   : > { %1657 = shalt.err (!%p1654_p10)
}
 0x1d5   : > { %s1658_s24 = scalar_lea.hbm %s2066_s8, 128  ;;  %s1662_s23 = scalar_lea.hbm %s2107_s4, 256 }
 0x1d6   : > { %p1659_p1 = scmp.ne.s32.totalorder %s2066_s8, %s1658_s24  ;;  %p1663_p7 = scmp.lt.s32.totalorder %s2066_s8, %s2107_s4 }
 0x1d7   : > { %p1664_p8 = scmp.lt.s32.totalorder %s1662_s23, %s1658_s24 }
 0x1d8   : > { %p1660_p4 = pnand %p1659_p1, %p2125_p12 }
 0x1d9   : > { %p1665_p11 = por %p1664_p8, %p1663_p7 }
 0x1da   : > { %p1661_p3 = pneg %p1660_p4 }
 0x1dc   : > { %p1666_p6 = pnand %p1665_p11, %p1661_p3 }
 0x1de   : > { %1669 = shalt.err (!%p1666_p6)
}
 0x1df   : > { %1322 = dma.vmem_to_hbm [thread:$0]  (%p2125_p12), %s1108_s5, 128, %s2066_s8, %s1094_s2  }
 0x1e0 PF: > { %s1119_s21 = sand.u32 1, %s1704_s15   ;;  %p2126_p2 = scmp.ne.s32.totalorder %s2114_s22, 0 }
 0x1e1   : > { %p2127_p13 = scmp.ge.s32.totalorder %s1716_s18, 2  ;;  %s1120_s25 = scalar_lea.sflag [#allocation4], %s1119_s21 }
 0x1e3   : > { %p1336_p0 = pnand %p2127_p13, %p2126_p2 }
 0x1e5   : > { %p1337_p5 = pneg %p1336_p0 }
 0x1e7   : > { %1699 = dma.done.wait (%p1337_p5), %s1120_s25, 128  }
 0x1e8   : > { %1701 = vsyncadd (%p1337_p5), %s1120_s25, 4294967168  ;;  %p20_p9 = scmp.ge.s32.totalorder %s1807_s27, 4   ;;  %s2128_s15 = smov %s1708_s16 }
 0x1e9   : > { %s2129_s16 = smov %s1712_s17  ;;  %s2130_s17 = smov %s1824_s9 }
 0x1ea   : > { %s2131_s18 = smov %s1807_s27  ;;  %22 = sbr.rel (!%p20_p9) target bundleno = 10 (0xa), region = 98 }
 0x1ef   :  { %1125 = vsyncpa [#allocation3], 1 }
 0x1f0   :  { %1127 = vsyncpa [#allocation3 + $0x1], 1 }
 0x1f1   :  { %1128 = vsyncpa [#allocation6], 1 }
 0x1f2   :  { %1130 = vsyncpa [#allocation6 + $0x1], 1 }
 0x1f3   :  { %1131 = vsyncpa [#allocation4], 1 }
 0x1f4   :  { %1133 = vsyncpa [#allocation4 + $0x1], 1 }

// kernel: tpu_custom_call.1
= control target key start
LH: loop header
LB: loop body
LE: loop exit
PB: predicated region body
PF: predicated region fallthrough
CT: control target
= control target key end

     0   :  { %s2103_s0 = inlined_call_operand.hbm [shape: bf16[128,128], index: 0, kind: input, shape index: {}]   ;;  %s2104_s1 = inlined_call_operand.hbm [shape: f32[128,128], index: 1, kind: input, shape index: {}]   ;;  %s2105_s2 = inlined_call_operand.hbm [shape: bf16[256,512], index: 2, kind: input, shape index: {}]   ;;  %s2106_s3 = inlined_call_operand.vmem [shape: f32[1,512], index: 3, kind: input, shape index: {}]   ;;  %s2107_s4 = inlined_call_operand.hbm [shape: f32[16,128], index: 4, kind: output, shape index: {}]  }
   0x1   :  { %2111 = sst [smem:[#allocation13_spill]] %s2103_s0 }
   0x2   :  { %2112 = sst [smem:[#allocation14_spill]] %s2105_s2 }
   0x3   :  { %9 = vsyncpa [#allocation3], 0 }
   0x4   :  { %11 = vsyncpa [#allocation3 + $0x1], 0 }
   0x5   :  { %12 = vsyncpa [#allocation6], 0 }
   0x6   :  { %14 = vsyncpa [#allocation6 + $0x1], 0 }
   0x7   :  { %15 = vsyncpa [#allocation4], 0 }
   0x8   :  { %17 = vsyncpa [#allocation4 + $0x1], 0  ;;  %s1753_s15 = smov 0   ;;  %s1755_s16 = smov 0  }
   0x9   :  { %s1757_s17 = smov 0   ;;  %s1759_s18 = smov 0  }
   0xa LB: > { %s1774_s19 = sadd.s32 4294967295, %s1716_s18   ;;  %s1209_s20 = sadd.s32 4294967294, %s1716_s18   ;;  %s1716_s18 = sphi %s1759_s18, %s2131_s18   ;;  %s1712_s17 = sphi %s1757_s17, %s2130_s17   ;;  %s1708_s16 = sphi %s1755_s16, %s2129_s16   ;;  %s1704_s15 = sphi %s1753_s15, %s2128_s15  }
   0xb   : > { %p43_p0 = scmp.ne.s32.totalorder %s1708_s16, %s1704_s15  ;;  %p2108_p1 = scmp.eq.s32.totalorder %s1774_s19, 0 }
   0xc   : > { %p141_p3 = scmp.eq.s32.totalorder %s1209_s20, 1  ;;  %p1210_p5 = scmp.ge.s32.totalorder %s1716_s18, 1 }
   0xd   : > { %p1783_p4 = por %p2108_p1, %p43_p0  ;;  %p148_p7 = scmp.lt.s32.totalorder %s1716_s18, 3 }
   0xe   : > { %p1788_p6 = por %p141_p3, %p43_p0  ;;  %s1718_s24 = smov [#allocation7]  }
   0xf   : > { %s2113_s21 = scalar_select %p1783_p4, 1, 0 }
  0x10   : > { %s2114_s22 = scalar_select %p1788_p6, 1, 0 }
  0x11   : > { %p1793_p8 = pnand %p1210_p5, %p148_p7  ;;  %s160_s25 = sshll.u32 %s1718_s24, 4  ;;  %s161_s25 = int_to_ptr.vmem [resolvable:$true] %s160_s25 }
  0x12   : > { %s1807_s27 = sadd.s32 1, %s1716_s18   ;;  %s30_s28 = sadd.s32 1, %s1712_s17 }
  0x13   : > { %p1324_p9 = pneg %p1793_p8  ;;  %s27_s29 = ssub.s32 %s1716_s18, %s1807_s27 }
  0x14   : > { %s1573_s30 = scalar_lea.vmem %s161_s25, 8192  ;;  %p1581_p5 = scmp.lt.s32.totalorder %s161_s25, %s161_s25 }
  0x15   : > { %p1802_p11 = pnand %p1324_p9, %p2108_p1  ;;  %p1574_p13 = scmp.ne.s32.totalorder %s161_s25, %s1573_s30 }
  0x16   : > { %p1582_p7 = scmp.lt.s32.totalorder %s1573_s30, %s1573_s30 }
  0x17   : > { %p1564_p12 = pneg %p1802_p11 }
  0x18   : > { %p1583_p10 = por %p1582_p7, %p1581_p5 }
  0x19   : > { %p1576_p0 = pnand %p1574_p13, %p1564_p12 }
  0x1b   : > { %p1577_p3 = pneg %p1576_p0 }
  0x1d   : > { %p1584_p2 = pnand %p1583_p10, %p1577_p3 }
  0x1f   : > { %1587 = shalt.err (!%p1584_p2)
}
  0x20   : > { %s1719_s5 = smov 256   ;;  %s1720_s6 = smov 16  }
  0x21   : > { %s2117_s2 = sld [smem:[#allocation14_spill]]  ;;  %p28_p9 = scmp.eq.s32.totalorder %s27_s29, 0 }
  0x22   : > { %p37_p12 = scmp.ne.s32.totalorder %s1712_s17, %s1708_s16  ;;  %p38_p10 = scmp.eq.s32.totalorder %s1716_s18, 0 }
  0x23   : > { %p1340_p2 = scmp.lt.s32.totalorder %s1716_s18, 2  ;;  %p2118_p0 = scmp.eq.s32.totalorder %s1774_s19, 1 }
  0x24   : > { %s1824_s9 = scalar_select %p28_p9, %s1712_s17, %s30_s28  }
  0x25   : > { %p39_p13 = por %p38_p10, %p37_p12  ;;  %p1828_p3 = por %p2118_p0, %p37_p12 }
  0x26   : > { %s1833_s11 = sand.u32 1, %s1712_s17   ;;  %s1312_s12 = sshll.u32 %s1716_s18, 9 }
  0x27   : > { %1327 = dma.hbm_to_vmem [thread:$0]  (!%p1802_p11), %s2117_s2, 8192, %s161_s25, [#allocation6], %s1719_s5, %s1719_s5, %s1720_s6  }
  0x28   : > { %s2119_s10 = scalar_select %p1828_p3, 1, 0 }
  0x29   : > { %s1213_s13 = sshll.u32 %s1833_s11, 5  ;;  %s2120_s0 = sld [smem:[#allocation13_spill]] }
  0x2a   : > { %s181_s25 = scalar_lea.vmem [#allocation2], %s1213_s13  ;;  %p1842_p11 = pnand %p1340_p2, %p39_p13 }
  0x2b   : > { %s188_s26 = sshll.u32 %s181_s25, 4  ;;  %s178_s29 = scalar_lea.sflag [#allocation3], %s1833_s11  ;;  %s1846_s26 = int_to_ptr.vmem [resolvable:$true] %s188_s26 }
  0x2c   : > { %p1590_p7 = pneg %p1842_p11 }
  0x2f   : > { %s1840_s24 = scalar_lea.hbm %s2120_s0, %s1312_s12  ;;  %s1593_s7 = scalar_lea.hbm %s2120_s0, 1024 }
  0x30   : > { %s1588_s30 = scalar_lea.hbm %s1840_s24, 512  ;;  %p1594_p10 = scmp.lt.s32.totalorder %s1840_s24, %s2120_s0 }
  0x31   : > { %p1589_p5 = scmp.ne.s32.totalorder %s1840_s24, %s1588_s30  ;;  %p1595_p2 = scmp.lt.s32.totalorder %s1593_s7, %s1588_s30 }
  0x33   : > { %p1591_p9 = pnand %p1590_p7, %p1589_p5  ;;  %p1596_p13 = por %p1595_p2, %p1594_p10 }
  0x35   : > { %p1592_p12 = pneg %p1591_p9 }
  0x37   : > { %p1597_p0 = pnand %p1596_p13, %p1592_p12 }
  0x39   : > { %1600 = shalt.err (!%p1597_p0)
}
  0x3a   : > { %s1601_s13 = scalar_lea.vmem %s1846_s26, 512  ;;  %s1721_s14 = smov [#allocation2]  }
  0x3b   : > { %p1602_p1 = scmp.ne.s32.totalorder %s1846_s26, %s1601_s13  ;;  %s1606_s20 = sshll.u32 %s1721_s14, 4  ;;  %s1607_s20 = int_to_ptr.vmem [resolvable:$false] %s1606_s20 }
  0x3c   : > { %s1608_s25 = scalar_lea.vmem %s1607_s20, 1024  ;;  %p1609_p6 = scmp.lt.s32.totalorder %s1846_s26, %s1607_s20 }
  0x3d   : > { %p1604_p5 = pnand %p1602_p1, %p1590_p7  ;;  %p1610_p3 = scmp.lt.s32.totalorder %s1608_s25, %s1601_s13 }
  0x3f   : > { %p1605_p9 = pneg %p1604_p5  ;;  %p1611_p4 = por %p1610_p3, %p1609_p6 }
  0x41   : > { %p1612_p10 = pnand %p1611_p4, %p1605_p9 }
  0x43   : > { %1615 = shalt.err (!%p1612_p10)
}
  0x44   : > { %s1722_s30 = smov 64   ;;  %s1723_s5 = smov 4  }
  0x45   : > { %1331 = dma.hbm_to_vmem [thread:$0]  (!%p1842_p11), %s1840_s24, 512, %s1846_s26, %s178_s29, %s1722_s30, %s1722_s30, %s1723_s5  }
  0x46   : > { %s198_s6 = sand.u32 1, %s1716_s18   ;;  %s1216_s7 = sshll.u32 %s1833_s11, 6 }
  0x47   : > { %s1313_s8 = sshll.u32 %s1716_s18, 10  ;;  %s202_s12 = scalar_lea.vmem [#allocation5], %s1216_s7 }
  0x48   : > { %s209_s13 = sshll.u32 %s202_s12, 4  ;;  %s1881_s25 = scalar_lea.hbm %s2104_s1, %s1313_s8  ;;  %s1883_s13 = int_to_ptr.vmem [resolvable:$true] %s209_s13 }
  0x49   : > { %s1885_s0 = scalar_lea.sflag [#allocation6], %s198_s6  ;;  %s1616_s2 = scalar_lea.hbm %s1881_s25, 1024 }
  0x4a   : > { %p1617_p1 = scmp.ne.s32.totalorder %s1881_s25, %s1616_s2  ;;  %s1621_s26 = scalar_lea.hbm %s2104_s1, 2048 }
  0x4b   : > { %p1622_p3 = scmp.lt.s32.totalorder %s1881_s25, %s2104_s1  ;;  %p1623_p12 = scmp.lt.s32.totalorder %s1621_s26, %s1616_s2 }
  0x4c   : > { %p1619_p4 = pnand %p1617_p1, %p1590_p7 }
  0x4d   : > { %p1624_p2 = por %p1623_p12, %p1622_p3 }
  0x4e   : > { %p1620_p6 = pneg %p1619_p4 }
  0x50   : > { %p1625_p13 = pnand %p1624_p2, %p1620_p6 }
  0x52   : > { %1628 = shalt.err (!%p1625_p13)
}
  0x53   : > { %s1629_s5 = scalar_lea.vmem %s1883_s13, 1024  ;;  %s1724_s6 = smov [#allocation5]  }
  0x54   : > { %p1630_p0 = scmp.ne.s32.totalorder %s1883_s13, %s1629_s5  ;;  %s1634_s7 = sshll.u32 %s1724_s6, 4  ;;  %s1635_s7 = int_to_ptr.vmem [resolvable:$false] %s1634_s7 }
  0x55   : > { %s1636_s8 = scalar_lea.vmem %s1635_s7, 2048  ;;  %p1637_p10 = scmp.lt.s32.totalorder %s1883_s13, %s1635_s7 }
  0x56   : > { %p1632_p5 = pnand %p1630_p0, %p1590_p7  ;;  %p1638_p1 = scmp.lt.s32.totalorder %s1636_s8, %s1629_s5 }
  0x58   : > { %p1633_p9 = pneg %p1632_p5  ;;  %p1639_p4 = por %p1638_p1, %p1637_p10 }
  0x5a   : > { %p1640_p3 = pnand %p1639_p4, %p1633_p9 }
  0x5c   : > { %1643 = shalt.err (!%p1640_p3)
}
  0x5d   : > { %s1725_s2 = smov 128   ;;  %s1726_s12 = smov 8  }
  0x5e   : > { %1334 = dma.hbm_to_vmem [thread:$0]  (!%p1842_p11), %s1881_s25, 1024, %s1883_s13, %s1885_s0, %s1725_s2, %s1725_s2, %s1726_s12  }
  0x5f   : > { %221 = sbr.rel (%p1793_p8) target bundleno = 480 (0x1e0), region = 36  ;;  %s1913_s14 = sand.u32 (!%p1793_p8), 1, %s1708_s16  }
  0x60   : > { %s1220_s20 = sshll.u32 (!%p1793_p8), %s1913_s14, 5  ;;  %s224_s11 = scalar_lea.sflag (!%p1793_p8), [#allocation3], %s1913_s14 }
  0x61   : > { %s1917_s24 = scalar_lea.vmem (!%p1793_p8), [#allocation2], %s1220_s20  ;;  %p2122_p7 = scmp.ne.s32.totalorder (!%p1793_p8), %s2113_s21, 0 }
  0x64   : > { %1687 = dma.done.wait (%p2122_p7), %s224_s11, 512  }
  0x65   : > { %1689 = vsyncadd (%p2122_p7), %s224_s11, 4294966784  ;;  %s232_s0 = sand.u32 1, %s1774_s19   ;;  %s1221_s23 = sshll.u32 %s1913_s14, 6 }
  0x66   : > { %s233_s28 = scalar_lea.sflag [#allocation6], %s232_s0  ;;  %s1925_s13 = scalar_lea.vmem [#allocation5], %s1221_s23 }
  0x67   : > { %1691 = dma.done.wait (%p2122_p7), %s233_s28, 1024  }
  0x68   : > { %1693 = vsyncadd (%p2122_p7), %s233_s28, 4294966272  ;;  %p2123_p8 = scmp.eq.s32.totalorder %s1774_s19, 0 }
  0x6a   : > { %1695 = dma.done.wait (%p2123_p8), [#allocation6], 8192   ;;  %p2124_p11 = pmov %p2123_p8 }
  0x6b   : > { %v1382_v0 = vld [vmem:[#allocation7 + $0xe4] ss:$16 sps:$4 sm:$0xff]   ;;  %v1384_v1 = vld [vmem:[#allocation7 + $0xe0] ss:$16 sps:$4 sm:$0xff]   ;;  %v1402_v7 = vld [vmem:[#allocation7 + $0xec] ss:$16 sps:$4 sm:$0xff]  }
  0x6c   : > { %1697 = vsyncadd (%p2124_p11), [#allocation6], 4294959104  ;;  %722 = vmatprep.subr.bf16.mxu0 %v1382_v0  ;;  %v1385_v2 = vld [vmem:[#allocation7 + $0xc4] ss:$16 sps:$4 sm:$0xff]   ;;  %v1387_v3 = vld [vmem:[#allocation7 + $0xc0] ss:$16 sps:$4 sm:$0xff]   ;;  %795 = vmatprep.subr.bf16.mxu1 %v1402_v7 }
  0x6d   : > { %723 = vmatpush1.bf16.msra.mxu0 %v1384_v1  ;;  %v1388_v4 = vld [vmem:[#allocation7 + $0xa4] ss:$16 sps:$4 sm:$0xff]   ;;  %v1390_v5 = vld [vmem:[#allocation7 + $0xa0] ss:$16 sps:$4 sm:$0xff]   ;;  %v1405_v8 = vld [vmem:[#allocation7 + $0xe8] ss:$16 sps:$4 sm:$0xff]  }
  0x6e   : > { %724 = vmatprep.subr.bf16.mxu0 %v1385_v2  ;;  %v1391_v6 = vld [vmem:[#allocation7 + $0x84] ss:$16 sps:$4 sm:$0xff]   ;;  %v1393_v9 = vld [vmem:[#allocation7 + $0x80] ss:$16 sps:$4 sm:$0xff]   ;;  %796 = vmatpush1.bf16.msra.mxu1 %v1405_v8  ;;  %v1408_v11 = vld [vmem:[#allocation7 + $0xcc] ss:$16 sps:$4 sm:$0xff]  }
  0x6f   : > { %v1394_v10 = vld [vmem:[#allocation7 + $0x64] ss:$16 sps:$4 sm:$0xff]   ;;  %v1411_v12 = vld [vmem:[#allocation7 + $0xc8] ss:$16 sps:$4 sm:$0xff]   ;;  %797 = vmatprep.subr.bf16.mxu1 %v1408_v11  ;;  %v1396_v13 = vld [vmem:[#allocation7 + $0x60] ss:$16 sps:$4 sm:$0xff]  }
  0x70   : > { %v1397_v14 = vld [vmem:[#allocation7 + $0x44] ss:$16 sps:$4 sm:$0xff]   ;;  %v1414_v15 = vld [vmem:[#allocation7 + $0xac] ss:$16 sps:$4 sm:$0xff]   ;;  %v1417_v16 = vld [vmem:[#allocation7 + $0xa8] ss:$16 sps:$4 sm:$0xff]  }
  0x71   : > { %725 = vmatpush1.bf16.msra.mxu0 %v1387_v3  ;;  %v1420_v17 = vld [vmem:[#allocation7 + $0x8c] ss:$16 sps:$4 sm:$0xff]   ;;  %v1399_v18 = vld [vmem:[#allocation7 + $0x40] ss:$16 sps:$4 sm:$0xff]   ;;  %v1400_v19 = vld [vmem:[#allocation7 + $0x24] ss:$16 sps:$4 sm:$0xff]  }
  0x72   : > { %726 = vmatprep.subr.bf16.mxu0 %v1388_v4  ;;  %798 = vmatpush1.bf16.msra.mxu1 %v1411_v12  ;;  %v1423_v20 = vld [vmem:[#allocation7 + $0x88] ss:$16 sps:$4 sm:$0xff]   ;;  %v1426_v21 = vld [vmem:[#allocation7 + $0x6c] ss:$16 sps:$4 sm:$0xff]   ;;  %v1404_v22 = vld [vmem:[#allocation7 + $0x20] ss:$16 sps:$4 sm:$0xff]  }
  0x73   : > { %799 = vmatprep.subr.bf16.mxu1 %v1414_v15  ;;  %v1406_v23 = vld [vmem:[#allocation7 + $0x4] ss:$16 sps:$4 sm:$0xff]   ;;  %v1429_v24 = vld [vmem:[#allocation7 + $0x68] ss:$16 sps:$4 sm:$0xff]   ;;  %v1432_v25 = vld [vmem:[#allocation7 + $0x4c] ss:$16 sps:$4 sm:$0xff]  }
  0x74   : > { %v1410_v26 = vld [vmem:[#allocation7] ss:$16 sps:$4 sm:$0xff]   ;;  %v1412_v27 = vld [vmem:[#allocation7 + $0x1e4] ss:$16 sps:$4 sm:$0xff]   ;;  %v1435_v28 = vld [vmem:[#allocation7 + $0x48] ss:$16 sps:$4 sm:$0xff]  }
  0x75   : > { %727 = vmatpush1.bf16.msra.mxu0 %v1390_v5  ;;  %v1438_v29 = vld [vmem:[#allocation7 + $0x2c] ss:$16 sps:$4 sm:$0xff]   ;;  %v1416_v30 = vld [vmem:[#allocation7 + $0x1e0] ss:$16 sps:$4 sm:$0xff]   ;;  %v1418_v31 = vld [vmem:[#allocation7 + $0x1c4] ss:$16 sps:$4 sm:$0xff]  }
  0x76   : > { %728 = vmatprep.subr.bf16.mxu0 %v1391_v6  ;;  %800 = vmatpush1.bf16.msra.mxu1 %v1417_v16  ;;  %v1441_v32 = vld [vmem:[#allocation7 + $0x28] ss:$16 sps:$4 sm:$0xff]   ;;  %v1444_v33 = vld [vmem:[#allocation7 + $0xc] ss:$16 sps:$4 sm:$0xff]   ;;  %v1422_v34 = vld [vmem:[#allocation7 + $0x1c0] ss:$16 sps:$4 sm:$0xff]   ;;  %v382_v16 = vlaneseq }
  0x77   : > { %801 = vmatprep.subr.bf16.mxu1 %v1420_v17  ;;  %v1424_v35 = vld [vmem:[#allocation7 + $0x1a4] ss:$16 sps:$4 sm:$0xff]   ;;  %v1939_v37 = vld [vmem:[%s1925_s13 + $0x8] sm:$0xff]  ;;  %v1428_v41 = vld [vmem:[#allocation7 + $0x1a0] ss:$16 sps:$4 sm:$0xff]   ;;  %s1223_s26 = sshll.u32 %s1913_s14, 3 }
  0x78   : > { %v1936_v36 = vld [vmem:[%s1925_s13] sm:$0xff]  ;;  %v1447_v38 = vld [vmem:[#allocation7 + $0x8] ss:$16 sps:$4 sm:$0xff]   ;;  %v1450_v40 = vld [vmem:[#allocation7 + $0x1ec] ss:$16 sps:$4 sm:$0xff]   ;;  %v1971_v17 = vshrl.u32 %v382_v16, 7 }
  0x79   : > { %729 = vmatpush1.bf16.msra.mxu0 %v1393_v9  ;;  %v288_v39 = vpack.c.bf16 %v1939_v37, %v1936_v36  ;;  %v1430_v42 = vld [vmem:[#allocation7 + $0x184] ss:$16 sps:$4 sm:$0xff]   ;;  %v1453_v43 = vld [vmem:[#allocation7 + $0x1e8] ss:$16 sps:$4 sm:$0xff]   ;;  %v1456_v44 = vld [vmem:[#allocation7 + $0x1cc] ss:$16 sps:$4 sm:$0xff]  }
  0x7a   : > { %730 = vmatprep.subr.bf16.mxu0 %v1394_v10  ;;  %802 = vmatpush1.bf16.msra.mxu1 %v1423_v20  ;;  %v1434_v45 = vld [vmem:[#allocation7 + $0x180] ss:$16 sps:$4 sm:$0xff]   ;;  %v1436_v46 = vld [vmem:[#allocation7 + $0x164] ss:$16 sps:$4 sm:$0xff]   ;;  %v1459_v47 = vld [vmem:[#allocation7 + $0x1c8] ss:$16 sps:$4 sm:$0xff]  }
  0x7b   : > { %803 = vmatprep.subr.bf16.mxu1 %v1426_v21  ;;  %754 = vmatprep.mubr.bf16.mxu0 %v288_v39  ;;  %v1461_v48 = vld [vmem:[#allocation7 + $0x1ac] ss:$16 sps:$4 sm:$0xff]   ;;  %v1440_v49 = vld [vmem:[#allocation7 + $0x160] ss:$16 sps:$4 sm:$0xff]   ;;  %v1442_v50 = vld [vmem:[#allocation7 + $0x144] ss:$16 sps:$4 sm:$0xff]  }
  0x7c   : > { %827 = vmatprep.mubr.bf16.mxu1 %v288_v39  ;;  %v1463_v51 = vld [vmem:[#allocation7 + $0x1a8] ss:$16 sps:$4 sm:$0xff]   ;;  %v1464_v52 = vld [vmem:[#allocation7 + $0x18c] ss:$16 sps:$4 sm:$0xff]   ;;  %v1446_v53 = vld [vmem:[#allocation7 + $0x140] ss:$16 sps:$4 sm:$0xff]  }
  0x7d   : > { %731 = vmatpush1.bf16.msra.mxu0 %v1396_v13  ;;  %v1448_v54 = vld [vmem:[#allocation7 + $0x124] ss:$16 sps:$4 sm:$0xff]   ;;  %v1466_v55 = vld [vmem:[#allocation7 + $0x188] ss:$16 sps:$4 sm:$0xff]   ;;  %v1468_v56 = vld [vmem:[#allocation7 + $0x16c] ss:$16 sps:$4 sm:$0xff]  }
  0x7e   : > { %732 = vmatprep.subr.bf16.mxu0 %v1397_v14  ;;  %804 = vmatpush1.bf16.msra.mxu1 %v1429_v24  ;;  %v1452_v57 = vld [vmem:[#allocation7 + $0x120] ss:$16 sps:$4 sm:$0xff]   ;;  %v1454_v58 = vld [vmem:[#allocation7 + $0x104] ss:$16 sps:$4 sm:$0xff]   ;;  %v1470_v59 = vld [vmem:[#allocation7 + $0x168] ss:$16 sps:$4 sm:$0xff]  }
  0x7f   : > { %805 = vmatprep.subr.bf16.mxu1 %v1432_v25  ;;  %v1471_v60 = vld [vmem:[#allocation7 + $0x14c] ss:$16 sps:$4 sm:$0xff]   ;;  %v1458_v61 = vld [vmem:[#allocation7 + $0x100] ss:$16 sps:$4 sm:$0xff]   ;;  %v1473_v0 = vld [vmem:[#allocation7 + $0x148] ss:$16 sps:$4 sm:$0xff]  }
  0x80   : > { %v1944_v62 = vld [vmem:[%s1925_s13 + $0x10] sm:$0xff]  ;;  %v1947_v63 = vld [vmem:[%s1925_s13 + $0x18] sm:$0xff]  ;;  %v1460_v2 = vld [vmem:[%s1917_s24] sm:$0xff]   ;;  %v388_v25 = vsub.s32 1, %v1971_v17  ;;  %v392_v16 = vsub.s32 2, %v1971_v17  ;;  %vm1077_vm0 = vcmask 1041409  }
  0x81   : > { %733 = vmatpush1.bf16.msra.mxu0 %v1399_v18  ;;  %v1475_v1 = vld [vmem:[#allocation7 + $0x12c] ss:$16 sps:$4 sm:$0xff]   ;;  %v289_v3 = vpack.c.bf16 %v1947_v63, %v1944_v62  ;;  %v1477_v4 = vld [vmem:[#allocation7 + $0x128] ss:$16 sps:$4 sm:$0xff]   ;;  %v1953_v6 = vld [vmem:[%s1925_s13 + $0x20] sm:$0xff]  ;;  %v384_v18 = vsub.s32 0, %v1971_v17 }
  0x82   : > { %734 = vmatprep.subr.bf16.mxu0 %v1400_v19  ;;  %806 = vmatpush1.bf16.msra.mxu1 %v1435_v28  ;;  %v1478_v5 = vld [vmem:[#allocation7 + $0x10c] ss:$16 sps:$4 sm:$0xff]   ;;  %v1480_v8 = vld [vmem:[#allocation7 + $0x108] ss:$16 sps:$4 sm:$0xff]   ;;  %v1962_v11 = vld [vmem:[%s1925_s13 + $0x30] sm:$0xff]  ;;  %vm1079_vm1 = vcmask 1042434  }
  0x83   : > { %807 = vmatprep.subr.bf16.mxu1 %v1438_v29  ;;  %v1956_v7 = vld [vmem:[%s1925_s13 + $0x28] sm:$0xff]  ;;  %v1965_v12 = vld [vmem:[%s1925_s13 + $0x38] sm:$0xff]  ;;  %v1474_v13 = vld [vmem:[%s1917_s24 + $0x10] sm:$0xff]   ;;  %vm1081_vm2 = vcmask 1043459   ;;  %vm1083_vm3 = vcmask 1044484   ;;  %vm1085_vm4 = vcmask 1045509  }
  0x84   : > { %v1467_v9 = vld [vmem:[%s1917_s24 + $0x8] sm:$0xff]   ;;  %v290_v10 = vpack.c.bf16 %v1956_v7, %v1953_v6  ;;  %v291_v14 = vpack.c.bf16 %v1965_v12, %v1962_v11  ;;  %v1481_v15 = vld [vmem:[%s1917_s24 + $0x18] sm:$0xff]   ;;  %v1977_v19 = vld [vmem:[%s2106_s3] sm:$0xf]  ;;  %vm1087_vm5 = vcmask 1046534   ;;  %s1309_s29 = sshll.u32 %s1774_s19, 7 }
  0x85   : > { %735 = vmatpush1.bf16.msra.mxu0 %v1404_v22  ;;  %v1980_v20 = vrot.slane %v1977_v19, %v384_v18  ;;  %v1986_v29 = vrot.slane %v1977_v19, %v388_v25  ;;  %s269_s30 = scalar_lea.vmem [#allocation8], %s1223_s26  ;;  %vm1089_vm6 = vcmask 1047559   ;;  %s2066_s8 = scalar_lea.hbm %s2107_s4, %s1309_s29 }
  0x86   : > { %736 = vmatprep.subr.bf16.mxu0 %v1406_v23  ;;  %808 = vmatpush1.bf16.msra.mxu1 %v1441_v32  ;;  %s1107_s5 = sshll.u32 %s269_s30, 4  ;;  %s1094_s2 = scalar_lea.sflag [#allocation4], %s1913_s14  ;;  %s1108_s5 = int_to_ptr.vmem [resolvable:$true] %s1107_s5 }
  0x87   : > { %809 = vmatprep.subr.bf16.mxu1 %v1444_v33  ;;  %s1644_s12 = scalar_lea.vmem %s1108_s5, 128  ;;  %p2125_p12 = scmp.ne.s32.totalorder %s2119_s10, 0 }
  0x88   : > { %p1645_p6 = scmp.ne.s32.totalorder %s1108_s5, %s1644_s12  ;;  %s1727_s19 = smov [#allocation8]  }
  0x89   : > { %737 = vmatpush1.bf16.msra.mxu0 %v1410_v26  ;;  %s1648_s20 = sshll.u32 %s1727_s19, 4  ;;  %s1649_s20 = int_to_ptr.vmem [resolvable:$false] %s1648_s20 }
  0x8a   : > { %738 = vmatprep.subr.bf16.mxu0 %v1412_v27  ;;  %810 = vmatpush1.bf16.msra.mxu1 %v1447_v38  ;;  %p1646_p2 = pnand %p1645_p6, %p2125_p12  ;;  %s1650_s11 = scalar_lea.vmem %s1649_s20, 256 }
  0x8b   : > { %811 = vmatprep.subr.bf16.mxu1 %v1450_v40  ;;  %p1651_p0 = scmp.lt.s32.totalorder %s1108_s5, %s1649_s20  ;;  %p1652_p5 = scmp.lt.s32.totalorder %s1650_s11, %s1644_s12 }
  0x8c   : > { %p1647_p13 = pneg %p1646_p2 }
  0x8d   : > { %739 = vmatpush2.bf16.msra.mxu0 %v1416_v30  ;;  %p1653_p9 = por %p1652_p5, %p1651_p0 }
  0x8e   : > { %740 = vmatprep.subr.bf16.mxu0 %v1418_v31  ;;  %812 = vmatpush2.bf16.msra.mxu1 %v1453_v43 }
  0x8f   : > { %813 = vmatprep.subr.bf16.mxu1 %v1456_v44  ;;  %p1654_p10 = pnand %p1653_p9, %p1647_p13 }
  0x91   : > { %741 = vmatpush2.bf16.msra.mxu0 %v1422_v34 }
  0x92   : > { %742 = vmatprep.subr.bf16.mxu0 %v1424_v35  ;;  %814 = vmatpush2.bf16.msra.mxu1 %v1459_v47 }
  0x93   : > { %815 = vmatprep.subr.bf16.mxu1 %v1461_v48 }
  0x95   : > { %743 = vmatpush2.bf16.msra.mxu0 %v1428_v41 }
  0x96   : > { %744 = vmatprep.subr.bf16.mxu0 %v1430_v42  ;;  %816 = vmatpush2.bf16.msra.mxu1 %v1463_v51 }
  0x97   : > { %817 = vmatprep.subr.bf16.mxu1 %v1464_v52 }
  0x99   : > { %745 = vmatpush2.bf16.msra.mxu0 %v1434_v45 }
  0x9a   : > { %746 = vmatprep.subr.bf16.mxu0 %v1436_v46  ;;  %818 = vmatpush2.bf16.msra.mxu1 %v1466_v55 }
  0x9b   : > { %819 = vmatprep.subr.bf16.mxu1 %v1468_v56 }
  0x9d   : > { %747 = vmatpush2.bf16.msra.mxu0 %v1440_v49 }
  0x9e   : > { %748 = vmatprep.subr.bf16.mxu0 %v1442_v50  ;;  %820 = vmatpush2.bf16.msra.mxu1 %v1470_v59 }
  0x9f   : > { %821 = vmatprep.subr.bf16.mxu1 %v1471_v60 }
  0xa1   : > { %749 = vmatpush2.bf16.msra.mxu0 %v1446_v53 }
  0xa2   : > { %750 = vmatprep.subr.bf16.mxu0 %v1448_v54  ;;  %822 = vmatpush2.bf16.msra.mxu1 %v1473_v0 }
  0xa3   : > { %823 = vmatprep.subr.bf16.mxu1 %v1475_v1 }
  0xa5   : > { %751 = vmatpush2.bf16.msra.mxu0 %v1452_v57 }
  0xa6   : > { %752 = vmatprep.subr.bf16.mxu0 %v1454_v58  ;;  %824 = vmatpush2.bf16.msra.mxu1 %v1477_v4 }
  0xa7   : > { %825 = vmatprep.subr.bf16.mxu1 %v1478_v5 }
  0xa9   : > { %753 = vmatpush2.bf16.msra.mxu0 %v1458_v61 }
  0xaa   : > { %826 = vmatpush2.bf16.msra.mxu1 %v1480_v8 }
  0xac   : > { %755 = vmatmul.mubr.bf16.vlgmr.msra.gmra.mxu0 %v1460_v2 }
  0xad   : > { %764 = vmatprep.mubr.bf16.mxu0 %v289_v3  ;;  %828 = vmatmul.mubr.bf16.vlgmr.msra.gmra.mxu1 %v1460_v2 }
  0xae   : > { %837 = vmatprep.mubr.bf16.mxu1 %v289_v3 }
  0xb4   : > { %765 = vmatmul.mubr.bf16.gmra.mxu0 %v1467_v9 }
  0xb5   : > { %774 = vmatprep.mubr.bf16.mxu0 %v290_v10  ;;  %838 = vmatmul.mubr.bf16.gmra.mxu1 %v1467_v9  ;;  %v396_v9 = vsub.s32 3, %v1971_v17 }
  0xb6   : > { %847 = vmatprep.mubr.bf16.mxu1 %v290_v10 }
  0xbc   : > { %775 = vmatmul.mubr.bf16.gmra.mxu0 %v1474_v13 }
  0xbd   : > { %784 = vmatprep.mubr.bf16.mxu0 %v291_v14  ;;  %848 = vmatmul.mubr.bf16.gmra.mxu1 %v1474_v13 }
  0xbe   : > { %857 = vmatprep.mubr.bf16.mxu1 %v291_v14 }
  0xc4   : > { %785 = vmatmul.mubr.bf16.gmra.mxu0 %v1481_v15 }
  0xc5   : > { %858 = vmatmul.mubr.bf16.gmra.mxu1 %v1481_v15 }
 0x16c   : > { %v756_v21 = vpop.f32.mrf.mxu0 }
 0x16d   : > { %v757_v22 = vadd.f32 %v756_v21, %v1980_v20  ;;  %v1989_v33 = vpop.f32.mrf.mxu1 }
 0x16e   : > { %v758_v23 = vpop.f32.mrf.mxu0 }
 0x16f   : > { %v1292_v24 = vmul.f32 -1.442695, %v757_v22  ;;  %v759_v35 = vadd.f32 %v758_v23, %v1986_v29  ;;  %v1992_v39 = vpop.f32.mrf.mxu1 }
 0x170   : > { %v760_v26 = vpop.f32.mrf.mxu0 }
 0x171   : > { %1482 = vpow2.f32 %v1292_v24  ;;  %v761_v27 = vadd.f32 %v760_v26, %v1980_v20  ;;  %v1995_v42 = vpop.f32.mrf.mxu1  ;;  %v1300_v44 = vmul.f32 -1.442695, %v759_v35  ;;  %v2017_v24 = vrot.slane %v1977_v19, %v396_v9 }
 0x172   : > { %v762_v28 = vpop.f32.mrf.mxu0 }
 0x173   : > { %v1293_v30 = vmul.f32 -1.442695, %v761_v27  ;;  %v1997_v46 = vpop.f32.mrf.mxu1  ;;  %v763_v47 = vadd.f32 %v762_v28, %v1986_v29  ;;  %v2021_v28 = vrot.slane %v1977_v19, %v392_v16  ;;  %v832_v35 = vadd.f32 %v1992_v39, %v2017_v24 }
 0x174   : > { %v766_v31 = vpop.f32.mrf.mxu0 }
 0x175   : > { %1484 = vpow2.f32 %v1293_v30  ;;  %v767_v32 = vadd.f32 %v766_v31, %v1980_v20  ;;  %v2001_v50 = vpop.f32.mrf.mxu1  ;;  %v1301_v56 = vmul.f32 -1.442695, %v763_v47  ;;  %v830_v19 = vadd.f32 %v1989_v33, %v2021_v28 }
 0x176   : > { %v768_v34 = vpop.f32.mrf.mxu0  ;;  %v834_v33 = vadd.f32 %v1995_v42, %v2021_v28  ;;  %v840_v42 = vadd.f32 %v2001_v50, %v2021_v28 }
 0x177   : > { %v1294_v38 = vmul.f32 -1.442695, %v767_v32  ;;  %v2003_v55 = vpop.f32.mrf.mxu1  ;;  %v769_v57 = vadd.f32 %v768_v34, %v1986_v29 }
 0x178   : > { %v770_v40 = vpop.f32.mrf.mxu0 }
 0x179   : > { %1486 = vpow2.f32 %v1294_v38  ;;  %v771_v41 = vadd.f32 %v770_v40, %v1980_v20  ;;  %v2007_v2 = vpop.f32.mrf.mxu1  ;;  %v1302_v3 = vmul.f32 -1.442695, %v769_v57 }
 0x17a   : > { %v772_v43 = vpop.f32.mrf.mxu0  ;;  %v844_v16 = vadd.f32 %v2007_v2, %v2021_v28 }
 0x17b   : > { %v1295_v45 = vmul.f32 -1.442695, %v771_v41  ;;  %v773_v4 = vadd.f32 %v772_v43, %v1986_v29  ;;  %v2013_v18 = vpop.f32.mrf.mxu1 }
 0x17c   : > { %v776_v48 = vpop.f32.mrf.mxu0 }
 0x17d   : > { %1488 = vpow2.f32 %v1295_v45  ;;  %v777_v49 = vadd.f32 %v776_v48, %v1980_v20  ;;  %v1303_v21 = vmul.f32 -1.442695, %v773_v4  ;;  %v2023_v30 = vpop.f32.mrf.mxu1 }
 0x17e   : > { %v1483_v51 = vpop.eup %1482  ;;  %v778_v52 = vpop.f32.mrf.mxu0  ;;  %1490 = vpow2.f32 %v1300_v44 }
 0x17f   : > { %v892_v53 = vadd.f32 1.0, %v1483_v51  ;;  %v1296_v54 = vmul.f32 -1.442695, %v777_v49  ;;  %v779_v23 = vadd.f32 %v778_v52, %v1986_v29  ;;  %v851_v43 = vpop.f32.mrf.mxu1  ;;  %v836_v51 = vadd.f32 %v1997_v46, %v2017_v24 }
 0x180   : > { %v780_v58 = vpop.f32.mrf.mxu0 }
 0x181   : > { %1492 = vrcp.f32 %v892_v53  ;;  %v781_v59 = vadd.f32 %v780_v58, %v1980_v20  ;;  %v1304_v34 = vmul.f32 -1.442695, %v779_v23 }
 0x182   : > { %v1485_v60 = vpop.eup %1484  ;;  %1494 = vpow2.f32 %v1296_v54  ;;  %v782_v61 = vpop.f32.mrf.mxu0 }
 0x183   : > { %v893_v0 = vadd.f32 1.0, %v1485_v60  ;;  %v1297_v1 = vmul.f32 -1.442695, %v781_v59  ;;  %1496 = vpow2.f32 %v1301_v56  ;;  %v783_v32 = vadd.f32 %v782_v61, %v1986_v29  ;;  %v853_v56 = vpop.f32.mrf.mxu1 }
 0x184   : > { %v786_v5 = vpop.f32.mrf.mxu0  ;;  %v842_v59 = vadd.f32 %v2003_v55, %v2017_v24 }
 0x185   : > { %1498 = vrcp.f32 %v893_v0  ;;  %v787_v8 = vadd.f32 %v786_v5, %v1980_v20  ;;  %v1305_v45 = vmul.f32 -1.442695, %v783_v32  ;;  %v855_v5 = vpop.f32.mrf.mxu1  ;;  %v850_v32 = vadd.f32 %v2023_v30, %v2021_v28 }
 0x186   : > { %v1487_v10 = vpop.eup %1486  ;;  %1500 = vpow2.f32 %v1297_v1  ;;  %v788_v13 = vpop.f32.mrf.mxu0 }
 0x187   : > { %v894_v14 = vadd.f32 1.0, %v1487_v10  ;;  %v1298_v15 = vmul.f32 -1.442695, %v787_v8  ;;  %1502 = vpow2.f32 %v1302_v3  ;;  %v789_v48 = vadd.f32 %v788_v13, %v1986_v29 }
 0x188   : > { %v790_v22 = vpop.f32.mrf.mxu0 }
 0x189   : > { %1504 = vrcp.f32 %v894_v14  ;;  %v791_v25 = vadd.f32 %v790_v22, %v1980_v20  ;;  %v1306_v61 = vmul.f32 -1.442695, %v789_v48 }
 0x18a   : > { %v1489_v26 = vpop.eup %1488  ;;  %1506 = vpow2.f32 %v1298_v15  ;;  %v792_v52 = vpop.f32.mrf.mxu0 }
 0x18b   : > { %v895_v27 = vadd.f32 1.0, %v1489_v26  ;;  %v1299_v17 = vmul.f32 -1.442695, %v791_v25  ;;  %v1491_v31 = vpop.eup %1490  ;;  %1508 = vpow2.f32 %v1303_v21  ;;  %v793_v46 = vadd.f32 %v792_v52, %v1986_v29  ;;  %v859_v21 = vpop.f32.mrf.mxu1 }
 0x18c   : > { %v940_v40 = vadd.f32 1.0, %v1491_v31  ;;  %v846_v29 = vadd.f32 %v2013_v18, %v2017_v24 }
 0x18d   : > { %1510 = vrcp.f32 %v895_v27  ;;  %v1307_v55 = vmul.f32 -1.442695, %v793_v46  ;;  %v852_v27 = vadd.f32 %v851_v43, %v2017_v24  ;;  %v861_v18 = vpop.f32.mrf.mxu1  ;;  %v854_v43 = vadd.f32 %v853_v56, %v2021_v28 }
 0x18e   : > { %v1493_v38 = vpop.eup %1492  ;;  %1512 = vpow2.f32 %v1299_v17  ;;  %v862_v52 = vadd.f32 %v861_v18, %v2017_v24 }
 0x18f   : > { %v1495_v20 = vpop.eup %1494  ;;  %v964_v41 = vmul.f32 %v1493_v38, %v832_v35  ;;  %1514 = vpow2.f32 %v1304_v34 }
 0x190   : > { %v896_v44 = vadd.f32 1.0, %v1495_v20  ;;  %v1497_v47 = vpop.eup %1496 }
 0x191   : > { %v972_v49 = vadd.f32 %v964_v41, %v830_v19  ;;  %v941_v57 = vadd.f32 1.0, %v1497_v47  ;;  %v863_v41 = vpop.f32.mrf.mxu1 }
 0x192   : > { %v1499_v39 = vpop.eup %1498  ;;  %1516 = vrcp.f32 %v896_v44 }
 0x193   : > { %v1501_v53 = vpop.eup %1500  ;;  %1518 = vrcp.f32 %v940_v40  ;;  %v965_v54 = vmul.f32 %v1499_v39, %v836_v51  ;;  %v856_v40 = vadd.f32 %v855_v5, %v2017_v24  ;;  %v864_v5 = vadd.f32 %v863_v41, %v2021_v28 }
 0x194   : > { %v897_v58 = vadd.f32 1.0, %v1501_v53  ;;  %1520 = vpow2.f32 %v1305_v45  ;;  %v1503_v60 = vpop.eup %1502 }
 0x195   : > { %1522 = vtanh.f32 %v972_v49  ;;  %v973_v0 = vadd.f32 %v965_v54, %v834_v33  ;;  %v942_v8 = vadd.f32 1.0, %v1503_v60  ;;  %v865_v33 = vpop.f32.mrf.mxu1 }
 0x196   : > { %v1505_v1 = vpop.eup %1504  ;;  %1524 = vrcp.f32 %v897_v58  ;;  %v860_v58 = vadd.f32 %v859_v21, %v2021_v28 }
 0x197   : > { %v1507_v3 = vpop.eup %1506  ;;  %1526 = vtanh.f32 %v973_v0  ;;  %v966_v4 = vmul.f32 %v1505_v1, %v842_v59  ;;  %v866_v0 = vadd.f32 %v865_v33, %v2017_v24 }
 0x198   : > { %1528 = vrcp.f32 %v941_v57  ;;  %v898_v9 = vadd.f32 1.0, %v1507_v3  ;;  %v1509_v10 = vpop.eup %1508 }
 0x199   : > { %1530 = vpow2.f32 %v1306_v61  ;;  %v974_v13 = vadd.f32 %v966_v4, %v840_v42  ;;  %v943_v23 = vadd.f32 1.0, %v1509_v10 }
 0x19a   : > { %v1511_v14 = vpop.eup %1510  ;;  %1532 = vrcp.f32 %v898_v9 }
 0x19b   : > { %v1513_v15 = vpop.eup %1512  ;;  %1534 = vtanh.f32 %v974_v13  ;;  %v967_v50 = vmul.f32 %v1511_v14, %v846_v29 }
 0x19c   : > { %1536 = vrcp.f32 %v942_v8  ;;  %v899_v22 = vadd.f32 1.0, %v1513_v15  ;;  %v1515_v26 = vpop.eup %1514 }
 0x19d   : > { %1538 = vpow2.f32 %v1307_v55  ;;  %v975_v25 = vadd.f32 %v967_v50, %v844_v16  ;;  %v944_v38 = vadd.f32 1.0, %v1515_v26 }
 0x19e   : > { %1540 = vrcp.f32 %v899_v22 }
 0x19f   : > { %v1517_v17 = vpop.eup %1516  ;;  %1542 = vtanh.f32 %v975_v25 }
 0x1a0   : > { %v1519_v31 = vpop.eup %1518  ;;  %v968_v34 = vmul.f32 %v1517_v17, %v852_v27  ;;  %1544 = vrcp.f32 %v943_v23 }
 0x1a1   : > { %v1521_v2 = vpop.eup %1520 }
 0x1a2   : > { %v1523_v35 = vpop.eup %1522  ;;  %v976_v20 = vadd.f32 %v968_v34, %v850_v32  ;;  %v945_v51 = vadd.f32 1.0, %v1521_v2 }
 0x1a3   : > { %v1525_v19 = vpop.eup %1524  ;;  %v988_v48 = vsub.f32 %v1936_v36, %v1523_v35 }
 0x1a4   : > { %v1527_v44 = vpop.eup %1526  ;;  %1546 = vtanh.f32 %v976_v20  ;;  %v969_v45 = vmul.f32 %v1525_v19, %v856_v40 }
 0x1a5   : > { %v1529_v47 = vpop.eup %1528  ;;  %v989_v30 = vsub.f32 %v1939_v37, %v1527_v44  ;;  %1548 = vrcp.f32 %v944_v38  ;;  %v996_v60 = vmul.f32 %v1519_v31, %v988_v48 }
 0x1a6   : > { %v1531_v49 = vpop.eup %1530  ;;  %v977_v39 = vadd.f32 %v969_v45, %v854_v43 }
 0x1a7   : > { %v1533_v53 = vpop.eup %1532  ;;  %v997_v57 = vmul.f32 %v1529_v47, %v989_v30  ;;  %v946_v37 = vadd.f32 1.0, %v1531_v49  ;;  %v1004_v9 = vadd.f32 %v1523_v35, %v996_v60 }
 0x1a8   : > { %v1535_v54 = vpop.eup %1534  ;;  %1550 = vtanh.f32 %v977_v39  ;;  %v970_v56 = vmul.f32 %v1533_v53, %v862_v52 }
 0x1a9   : > { %v1537_v59 = vpop.eup %1536  ;;  %v990_v36 = vsub.f32 %v1944_v62, %v1535_v54  ;;  %1552 = vrcp.f32 %v945_v51  ;;  %v1005_v4 = vadd.f32 %v1527_v44, %v997_v57  ;;  %v1012_v16 = vrot.slane %v1004_v9, 4 }
 0x1aa   : > { %v1539_v61 = vpop.eup %1538  ;;  %v978_v46 = vadd.f32 %v970_v56, %v860_v58 }
 0x1ab   : > { %v1541_v1 = vpop.eup %1540  ;;  %v998_v3 = vmul.f32 %v1537_v59, %v990_v36  ;;  %v947_v62 = vadd.f32 1.0, %v1539_v61  ;;  %v1018_v15 = vrot.slane %v1005_v4, 4 }
 0x1ac   : > { %v1543_v42 = vpop.eup %1542  ;;  %1554 = vtanh.f32 %v978_v46  ;;  %v971_v8 = vmul.f32 %v1541_v1, %v866_v0 }
 0x1ad   : > { %v1006_v10 = vadd.f32 %v1535_v54, %v998_v3  ;;  %v991_v55 = vsub.f32 %v1947_v63, %v1543_v42  ;;  %v1545_v13 = vpop.eup %1544  ;;  %1556 = vrcp.f32 %v946_v37  ;;  %v1019_v25 = vadd.f32 %v1018_v15, %v1005_v4 }
 0x1ae   : > { %v979_v29 = vadd.f32 %v971_v8, %v864_v5  ;;  %v1013_v63 = vadd.f32 %v1012_v16, %v1004_v9 }
 0x1af   : > { %v999_v14 = vmul.f32 %v1545_v13, %v991_v55  ;;  %v1024_v50 = vrot.slane %v1006_v10, 4  ;;  %v1020_v2 = vrot.slane %v1019_v25, 2 }
 0x1b0   : > { %1558 = vtanh.f32 %v979_v29  ;;  %v1014_v40 = vrot.slane %v1013_v63, 2 }
 0x1b1   : > { %v1547_v24 = vpop.eup %1546  ;;  %v1007_v21 = vadd.f32 %v1543_v42, %v999_v14  ;;  %1560 = vrcp.f32 %v947_v62  ;;  %v1025_v17 = vadd.f32 %v1024_v50, %v1006_v10  ;;  %v1021_v47 = vadd.f32 %v1020_v2, %v1019_v25 }
 0x1b2   : > { %v992_v22 = vsub.f32 %v1953_v6, %v1547_v24  ;;  %v1549_v28 = vpop.eup %1548  ;;  %v1015_v39 = vadd.f32 %v1014_v40, %v1013_v63 }
 0x1b3   : > { %v1030_v23 = vrot.slane %v1007_v21, 4  ;;  %v1026_v19 = vrot.slane %v1025_v17, 2  ;;  %v1022_v56 = vrot.slane %v1021_v47, 1 }
 0x1b4   : > { %v1000_v26 = vmul.f32 %v1549_v28, %v992_v22 }
 0x1b5   : > { %v1551_v27 = vpop.eup %1550  ;;  %v1031_v18 = vadd.f32 %v1030_v23, %v1007_v21  ;;  %v1023_v42 = vadd.f32 %v1022_v56, %v1021_v47 }
 0x1b6   : > { %v1008_v31 = vadd.f32 %v1547_v24, %v1000_v26  ;;  %v993_v32 = vsub.f32 %v1956_v7, %v1551_v27  ;;  %v1553_v34 = vpop.eup %1552  ;;  %v1027_v7 = vadd.f32 %v1026_v19, %v1025_v17 }
 0x1b7   : > { %v1032_v41 = vrot.slane %v1031_v18, 2  ;;  %v1062_v29 = vmul.f32 0.125, %v1023_v42 }
 0x1b8   : > { %v1036_v35 = vrot.slane %v1008_v31, 4  ;;  %v1001_v38 = vmul.f32 %v1553_v34, %v993_v32  ;;  %v1028_v61 = vrot.slane %v1027_v7, 1 }
 0x1b9   : > { %v1555_v20 = vpop.eup %1554  ;;  %v1033_v52 = vadd.f32 %v1032_v41, %v1031_v18 }
 0x1ba   : > { %v1037_v6 = vadd.f32 %v1036_v35, %v1008_v31  ;;  %v1009_v44 = vadd.f32 %v1551_v27, %v1001_v38  ;;  %v994_v43 = vsub.f32 %v1962_v11, %v1555_v20  ;;  %v1557_v45 = vpop.eup %1556  ;;  %v1016_v11 = vrot.slane %v1015_v39, 1 }
 0x1bb   : > { %v1034_v46 = vrot.slane %v1033_v52, 1  ;;  %v1029_v9 = vadd.f32 %v1028_v61, %v1027_v7 }
 0x1bc   : > { %v1038_v48 = vrot.slane %v1037_v6, 2  ;;  %v1042_v30 = vrot.slane %v1009_v44, 4  ;;  %v1002_v49 = vmul.f32 %v1557_v45, %v994_v43 }
 0x1bd   : > { %v1559_v51 = vpop.eup %1558  ;;  %v1035_v10 = vadd.f32 %v1034_v46, %v1033_v52  ;;  %v1063_v16 = vmul.f32 0.125, %v1029_v9 }
 0x1be   : > { %v1043_v53 = vadd.f32 %v1042_v30, %v1009_v44  ;;  %v1010_v33 = vadd.f32 %v1555_v20, %v1002_v49  ;;  %v995_v54 = vsub.f32 %v1965_v12, %v1559_v51  ;;  %v1561_v57 = vpop.eup %1560  ;;  %v1039_v58 = vadd.f32 %v1038_v48, %v1037_v6 }
 0x1bf   : > { %v1017_v12 = vadd.f32 %v1016_v11, %v1015_v39  ;;  %v1064_v28 = vmul.f32 0.125, %v1035_v10 }
 0x1c0   : > { %v1048_v59 = vrot.slane %v1010_v33, 4  ;;  %v1003_v60 = vmul.f32 %v1561_v57, %v995_v54  ;;  %v1044_v36 = vrot.slane %v1043_v53, 2  ;;  %v1040_v3 = vrot.slane %v1039_v58, 1 }
 0x1c1   : > { %v1061_v50 = vmul.f32 0.125, %v1017_v12 }
 0x1c2   : > { %v1011_v37 = vadd.f32 %v1559_v51, %v1003_v60  ;;  %v1045_v0 = vadd.f32 %v1044_v36, %v1043_v53  ;;  %v1049_v1 = vadd.f32 %v1048_v59, %v1010_v33  ;;  %v1041_v62 = vadd.f32 %v1040_v3, %v1039_v58 }
 0x1c3   : > { %v1078_v27 = vsel %vm1077_vm0, %v1062_v29, %v1061_v50 }
 0x1c4   : > { %v1046_v4 = vrot.slane %v1045_v0, 1  ;;  %v1050_v5 = vrot.slane %v1049_v1, 2  ;;  %v1054_v8 = vrot.slane %v1011_v37, 4  ;;  %v1065_v23 = vmul.f32 0.125, %v1041_v62 }
 0x1c5   : > { %v1080_v17 = vsel %vm1079_vm1, %v1063_v16, %v1078_v27 }
 0x1c6   : > { %v1051_v55 = vadd.f32 %v1050_v5, %v1049_v1  ;;  %v1055_v13 = vadd.f32 %v1054_v8, %v1011_v37  ;;  %v1047_v14 = vadd.f32 %v1046_v4, %v1045_v0  ;;  %v1082_v31 = vsel %vm1081_vm2, %v1064_v28, %v1080_v17 }
 0x1c7   : > { %v1084_v32 = vsel %vm1083_vm3, %v1065_v23, %v1082_v31 }
 0x1c8   : > { %v1052_v15 = vrot.slane %v1051_v55, 1  ;;  %v1056_v24 = vrot.slane %v1055_v13, 2  ;;  %v1066_v26 = vmul.f32 0.125, %v1047_v14 }
 0x1ca   : > { %v1053_v21 = vadd.f32 %v1052_v15, %v1051_v55  ;;  %v1057_v22 = vadd.f32 %v1056_v24, %v1055_v13  ;;  %v1086_v2 = vsel %vm1085_vm4, %v1066_v26, %v1084_v32 }
 0x1cc   : > { %v1058_v25 = vrot.slane %v1057_v22, 1  ;;  %v1067_v63 = vmul.f32 0.125, %v1053_v21 }
 0x1ce   : > { %v1059_v18 = vadd.f32 %v1058_v25, %v1057_v22  ;;  %v1088_v35 = vsel %vm1087_vm5, %v1067_v63, %v1086_v2 }
 0x1d0   : > { %v1068_v34 = vmul.f32 0.125, %v1059_v18 }
 0x1d2   : > { %v1090_v38 = vsel %vm1089_vm6, %v1068_v34, %v1088_v35 }
 0x1d3   : > { %1092 = vst [vmem:[%s269_s30] sm:$0xff] %v1090_v38 }
 0x1d4   : > { %1657 = shalt.err (!%p1654_p10)
}
 0x1d5   : > { %s1658_s24 = scalar_lea.hbm %s2066_s8, 128  ;;  %s1662_s23 = scalar_lea.hbm %s2107_s4, 256 }
 0x1d6   : > { %p1659_p1 = scmp.ne.s32.totalorder %s2066_s8, %s1658_s24  ;;  %p1663_p7 = scmp.lt.s32.totalorder %s2066_s8, %s2107_s4 }
 0x1d7   : > { %p1664_p8 = scmp.lt.s32.totalorder %s1662_s23, %s1658_s24 }
 0x1d8   : > { %p1660_p4 = pnand %p1659_p1, %p2125_p12 }
 0x1d9   : > { %p1665_p11 = por %p1664_p8, %p1663_p7 }
 0x1da   : > { %p1661_p3 = pneg %p1660_p4 }
 0x1dc   : > { %p1666_p6 = pnand %p1665_p11, %p1661_p3 }
 0x1de   : > { %1669 = shalt.err (!%p1666_p6)
}
 0x1df   : > { %1322 = dma.vmem_to_hbm [thread:$0]  (%p2125_p12), %s1108_s5, 128, %s2066_s8, %s1094_s2  }
 0x1e0 PF: > { %s1119_s21 = sand.u32 1, %s1704_s15   ;;  %p2126_p2 = scmp.ne.s32.totalorder %s2114_s22, 0 }
 0x1e1   : > { %p2127_p13 = scmp.ge.s32.totalorder %s1716_s18, 2  ;;  %s1120_s25 = scalar_lea.sflag [#allocation4], %s1119_s21 }
 0x1e3   : > { %p1336_p0 = pnand %p2127_p13, %p2126_p2 }
 0x1e5   : > { %p1337_p5 = pneg %p1336_p0 }
 0x1e7   : > { %1699 = dma.done.wait (%p1337_p5), %s1120_s25, 128  }
 0x1e8   : > { %1701 = vsyncadd (%p1337_p5), %s1120_s25, 4294967168  ;;  %p20_p9 = scmp.ge.s32.totalorder %s1807_s27, 4   ;;  %s2128_s15 = smov %s1708_s16 }
 0x1e9   : > { %s2129_s16 = smov %s1712_s17  ;;  %s2130_s17 = smov %s1824_s9 }
 0x1ea   : > { %s2131_s18 = smov %s1807_s27  ;;  %22 = sbr.rel (!%p20_p9) target bundleno = 10 (0xa), region = 98 }
 0x1ef   :  { %1125 = vsyncpa [#allocation3], 1 }
 0x1f0   :  { %1127 = vsyncpa [#allocation3 + $0x1], 1 }
 0x1f1   :  { %1128 = vsyncpa [#allocation6], 1 }
 0x1f2   :  { %1130 = vsyncpa [#allocation6 + $0x1], 1 }
 0x1f3   :  { %1131 = vsyncpa [#allocation4], 1 }
 0x1f4   :  { %1133 = vsyncpa [#allocation4 + $0x1], 1 }

</bundles_post_ra>
